<compile_context>
chip_gen: v6e
topology: v6e:2x2x1
jax: 0.10.0
libtpu: 0.0.40
codegen_flags: <defaults>
</compile_context>

<pallas_src>
import jax
import jax.numpy as jnp
from jax import lax
from jax.experimental import pallas as pl
from jax.experimental.pallas import tpu as pltpu


BTILE = 8  # batch rows per grid step (one sublane tile)


# ------------------------------ fused kernel ---------------------------------
def _make_fused_lstm_kernel(n_layers, T, Bt, H, Opad):
    """Fused multi-layer LSTM + projection kernel for one batch tile.

    Positional refs:
      x_ref                       (T*Bt, D_in)   time-major input for this batch tile
      per layer l:                wih (D_l, 4H), whh (H, 4H), b (1, 4H)
      wproj_ref                   (H, Opad)      zero-padded to 128 lanes
      bproj_ref                   (1, Opad)
      out_ref                     (T*Bt, Opad)
      gx_scr   (VMEM scratch)     (T*Bt, 4H)     x @ W_ih + b for all timesteps
      hseq_a / hseq_b (scratch)   (T*Bt, H)      ping-pong hidden sequences
    """

    def kernel(*refs):
        x_ref = refs[0]
        layer_refs = refs[1:1 + 3 * n_layers]
        (wproj_ref, bproj_ref, out_ref,
         gx_scr, hseq_a, hseq_b) = refs[1 + 3 * n_layers:]
        hbufs = (hseq_a, hseq_b)

        for l in range(n_layers):
            wih = layer_refs[3 * l][...]          # (D_l, 4H)
            whh = layer_refs[3 * l + 1][...]      # (H, 4H)
            b = layer_refs[3 * l + 2][...]        # (1, 4H)

            # Ping-pong: read previous layer's sequence, write this layer's into the
            # other buffer (no WAR hazard on a single scratch).
            layer_in = x_ref[...] if l == 0 else hbufs[(l - 1) % 2][...]
            out_buf = hbufs[l % 2]

            # Non-recurrent input contribution for ALL timesteps in one MXU matmul
            # (bias folded in, so the serial recurrence only does h @ W_hh).
            gx_scr[...] = (
                jnp.dot(layer_in, wih, preferred_element_type=jnp.float32) + b
            )

            def step(t, carry, whh=whh, out_buf=out_buf):
                h, c = carry
                start = pl.multiple_of(t * Bt, Bt)              # sublane aligned
                gates = gx_scr[pl.ds(start, Bt), :] + jnp.dot(
                    h, whh, preferred_element_type=jnp.float32
                )                                               # (Bt, 4H) = one vreg
                # Two full-vreg EUP ops instead of four quarter-vreg ones.
                sig = jax.nn.sigmoid(gates)
                th = jnp.tanh(gates)
                i_g = sig[:, 0 * H:1 * H]
                f_g = sig[:, 1 * H:2 * H]
                g_g = th[:, 2 * H:3 * H]
                o_g = sig[:, 3 * H:4 * H]
                c_new = f_g * c + i_g * g_g
                h_new = o_g * jnp.tanh(c_new)
                out_buf[pl.ds(start, Bt), :] = h_new
                return (h_new, c_new)

            zeros = jnp.zeros((Bt, H), jnp.float32)
            lax.fori_loop(0, T, step, (zeros, zeros), unroll=True)

        # Fused output projection: one matmul over the whole hidden sequence and a
        # single lane-dense (Opad = 128) store of the (T*Bt, Opad) output slab.
        h_last = hbufs[(n_layers - 1) % 2][...]
        out_ref[...] = (
            jnp.dot(h_last, wproj_ref[...], preferred_element_type=jnp.float32)
            + bproj_ref[...]
        ).astype(out_ref.dtype)

    return kernel


# ------------------------------- parameters ----------------------------------
def init_params(key, in_dim, hidden, n_layers, out_dim):
    """Deterministic init matching PyTorch LSTM/Linear parameter shapes."""
    params = {"lstm": [], "proj": None}
    scale = 1.0 / jnp.sqrt(hidden)
    for l in range(n_layers):
        d_in = in_dim if l == 0 else hidden
        key, k1, k2, k3, k4 = jax.random.split(key, 5)
        w_ih = jax.random.uniform(k1, (4 * hidden, d_in), jnp.float32, -scale, scale)
        w_hh = jax.random.uniform(k2, (4 * hidden, hidden), jnp.float32, -scale, scale)
        b_ih = jax.random.uniform(k3, (4 * hidden,), jnp.float32, -scale, scale)
        b_hh = jax.random.uniform(k4, (4 * hidden,), jnp.float32, -scale, scale)
        params["lstm"].append({"wih_t": w_ih.T, "whh_t": w_hh.T, "b": b_ih + b_hh})
    key, k1, k2 = jax.random.split(key, 3)
    pscale = 1.0 / jnp.sqrt(hidden)
    w_out = jax.random.uniform(k1, (out_dim, hidden), jnp.float32, -pscale, pscale)
    b_out = jax.random.uniform(k2, (out_dim,), jnp.float32, -pscale, pscale)
    params["proj"] = {"w_t": w_out.T, "b": b_out}
    return params


# ------------------------------- full predictor ------------------------------
@jax.jit
def lstm_predictor_forward(params, *inputs):
    # concat_inputs(*inp, dim=2): concatenate along the feature axis (batch_first).
    x = jnp.concatenate(inputs, axis=2).astype(jnp.float32)   # (B, T, D)
    B, T, D = x.shape
    n_layers = len(params["lstm"])
    H = params["lstm"][0]["whh_t"].shape[0]
    O = params["proj"]["w_t"].shape[1]
    Opad = max(128, pl.cdiv(O, 128) * 128)                    # lane-dense output

    # batch_first -> time-major; pad batch to a multiple of BTILE sublanes and split
    # into batch tiles laid out contiguously for the grid axis.
    Bp = max(BTILE, pl.cdiv(B, BTILE) * BTILE)
    nb = Bp // BTILE
    x_tm = jnp.transpose(x, (1, 0, 2))                        # (T, B, D)
    if Bp != B:
        x_tm = jnp.pad(x_tm, ((0, 0), (0, Bp - B), (0, 0)))
    x_tiles = (x_tm.reshape(T, nb, BTILE, D)
                   .transpose(1, 0, 2, 3)
                   .reshape(nb, T * BTILE, D))                # (nb, T*BTILE, D)

    wproj = params["proj"]["w_t"]                             # (H, O)
    bproj = params["proj"]["b"].reshape(1, O)
    if Opad != O:
        wproj = jnp.pad(wproj, ((0, 0), (0, Opad - O)))
        bproj = jnp.pad(bproj, ((0, 0), (0, Opad - O)))

    flat = [x_tiles]
    in_specs = [pl.BlockSpec((None, T * BTILE, D), lambda i: (i, 0, 0))]
    for lp in params["lstm"]:
        for a in (lp["wih_t"], lp["whh_t"], lp["b"].reshape(1, 4 * H)):
            flat.append(a)
            in_specs.append(pl.BlockSpec(a.shape, lambda i: (0, 0)))  # VMEM-resident
    flat += [wproj, bproj]
    in_specs += [pl.BlockSpec(wproj.shape, lambda i: (0, 0)),
                 pl.BlockSpec(bproj.shape, lambda i: (0, 0))]

    out3 = pl.pallas_call(
        _make_fused_lstm_kernel(n_layers, T, BTILE, H, Opad),
        out_shape=jax.ShapeDtypeStruct((nb, T * BTILE, Opad), jnp.float32),
        grid_spec=pltpu.PrefetchScalarGridSpec(
            num_scalar_prefetch=0,
            grid=(nb,),                           # independent batch tiles
            in_specs=in_specs,
            out_specs=pl.BlockSpec((None, T * BTILE, Opad), lambda i: (i, 0, 0)),
            scratch_shapes=[
                pltpu.VMEM((T * BTILE, 4 * H), jnp.float32),  # gates_x per layer
                pltpu.VMEM((T * BTILE, H), jnp.float32),      # hidden seq (ping)
                pltpu.VMEM((T * BTILE, H), jnp.float32),      # hidden seq (pong)
            ],
        ),
        compiler_params=pltpu.CompilerParams(
            dimension_semantics=("parallel",),     # megacore-shardable on v7x
        ),
    )(*flat)

    out = (out3.reshape(nb, T, BTILE, Opad)
               .transpose(1, 0, 2, 3)
               .reshape(T, Bp, Opad)[:, :B, :O])              # drop padding
    return jnp.transpose(out, (1, 0, 2))                      # (B, T, out_dim)


# pure-JAX reference (same math) for a correctness sanity check
def _reference_forward(params, *inputs):
    x = jnp.concatenate(inputs, axis=2).astype(jnp.float32)   # (B, T, D)
    h_seq = jnp.transpose(x, (1, 0, 2))                       # (T, B, D)
    for lp in params["lstm"]:
        H = lp["whh_t"].shape[0]
        B = h_seq.shape[1]

        def step(carry, x_t, lp=lp, H=H):
            h, c = carry
            gates = x_t @ lp["wih_t"] + h @ lp["whh_t"] + lp["b"]
            i = jax.nn.sigmoid(gates[:, 0 * H:1 * H])
            f = jax.nn.sigmoid(gates[:, 1 * H:2 * H])
            g = jnp.tanh(gates[:, 2 * H:3 * H])
            o = jax.nn.sigmoid(gates[:, 3 * H:4 * H])
            c = f * c + i * g
            h = o * jnp.tanh(c)
            return (h, c), h

        init = (jnp.zeros((B, H), jnp.float32), jnp.zeros((B, H), jnp.float32))
        _, h_seq = lax.scan(step, init, h_seq)
    out = h_seq @ params["proj"]["w_t"] + params["proj"]["b"]
    return jnp.transpose(out, (1, 0, 2))


if __name__ == "__main__":
    class HP:
        nz_mid_lstm = 32
        n_lstm_layers = 2

    B, T, IN_DIM, OUT_DIM = 2, 8, 16, 8

    key = jax.random.PRNGKey(0)
    key, kx, kp = jax.random.split(key, 3)
    x = jax.random.normal(kx, (B, T, IN_DIM), jnp.float32)
    params = init_params(kp, IN_DIM, HP.nz_mid_lstm, HP.n_lstm_layers, OUT_DIM)

    out = lstm_predictor_forward(params, x)
    out = jax.block_until_ready(out)

    ref = jax.block_until_ready(_reference_forward(params, x))
    assert out.shape == (B, T, OUT_DIM), out.shape
    assert jnp.allclose(out, ref, rtol=1e-3, atol=1e-3), "mismatch vs reference"

    print("KERNEL_OK")
</pallas_src>

<mosaic_0001>
module attributes {stable_mosaic.version = 11 : i64} {
  func.func @kernel(%arg0: i32, %arg1: memref<1x64x16xf32, #tpu.memory_space<vmem>>, %arg2: memref<16x128xf32, #tpu.memory_space<vmem>>, %arg3: memref<32x128xf32, #tpu.memory_space<vmem>>, %arg4: memref<1x128xf32, #tpu.memory_space<vmem>>, %arg5: memref<32x128xf32, #tpu.memory_space<vmem>>, %arg6: memref<32x128xf32, #tpu.memory_space<vmem>>, %arg7: memref<1x128xf32, #tpu.memory_space<vmem>>, %arg8: memref<32x128xf32, #tpu.memory_space<vmem>>, %arg9: memref<1x128xf32, #tpu.memory_space<vmem>>, %arg10: memref<1x64x128xf32, #tpu.memory_space<vmem>>, %arg11: memref<64x128xf32, #tpu.memory_space<vmem>>, %arg12: memref<64x32xf32, #tpu.memory_space<vmem>>, %arg13: memref<64x32xf32, #tpu.memory_space<vmem>>) attributes {dimension_semantics = [#tpu.dimension_semantics<parallel>], iteration_bounds = array<i64: 1>, scalar_prefetch = 0 : i64, scratch_operands = 3 : i64, tpu.core_type = #tpu.core_type<tc>, window_params = [{transform_indices = @transform_0, window_bounds = array<i64: 1, 64, 16>}, {pipeline_mode = #tpu.pipeline_mode<synchronous>, transform_indices = @transform_1, window_bounds = array<i64: 16, 128>}, {pipeline_mode = #tpu.pipeline_mode<synchronous>, transform_indices = @transform_2, window_bounds = array<i64: 32, 128>}, {pipeline_mode = #tpu.pipeline_mode<synchronous>, transform_indices = @transform_3, window_bounds = array<i64: 1, 128>}, {pipeline_mode = #tpu.pipeline_mode<synchronous>, transform_indices = @transform_4, window_bounds = array<i64: 32, 128>}, {pipeline_mode = #tpu.pipeline_mode<synchronous>, transform_indices = @transform_5, window_bounds = array<i64: 32, 128>}, {pipeline_mode = #tpu.pipeline_mode<synchronous>, transform_indices = @transform_6, window_bounds = array<i64: 1, 128>}, {pipeline_mode = #tpu.pipeline_mode<synchronous>, transform_indices = @transform_7, window_bounds = array<i64: 32, 128>}, {pipeline_mode = #tpu.pipeline_mode<synchronous>, transform_indices = @transform_8, window_bounds = array<i64: 1, 128>}, {transform_indices = @transform_9, window_bounds = array<i64: 1, 64, 128>}]} {
    %c0 = arith.constant 0 : index
    %c0_0 = arith.constant 0 : index
    %0 = vector.load %arg2[%c0, %c0_0] : memref<16x128xf32, #tpu.memory_space<vmem>>, vector<16x128xf32>
    %c0_1 = arith.constant 0 : index
    %c0_2 = arith.constant 0 : index
    %1 = vector.load %arg3[%c0_1, %c0_2] : memref<32x128xf32, #tpu.memory_space<vmem>>, vector<32x128xf32>
    %c0_3 = arith.constant 0 : index
    %c0_4 = arith.constant 0 : index
    %2 = vector.load %arg4[%c0_3, %c0_4] : memref<1x128xf32, #tpu.memory_space<vmem>>, vector<1x128xf32>
    %c0_5 = arith.constant 0 : index
    %c0_6 = arith.constant 0 : index
    %c0_7 = arith.constant 0 : index
    %3 = vector.load %arg1[%c0_5, %c0_6, %c0_7] : memref<1x64x16xf32, #tpu.memory_space<vmem>>, vector<1x64x16xf32>
    %4 = vector.shape_cast %3 : vector<1x64x16xf32> to vector<64x16xf32>
    %cst = arith.constant dense<0.000000e+00> : vector<64x128xf32>
    %5 = tpu.matmul %4, %0, %cst {dimension_numbers = #tpu.dot_dimension_numbers<[1], [0], [0], [1], [0, 0, 1, 1], [], []>} : vector<64x16xf32>, vector<16x128xf32>, vector<64x128xf32> -> vector<64x128xf32>
    %6 = vector.broadcast %2 : vector<1x128xf32> to vector<64x128xf32>
    %7 = arith.addf %5, %6 : vector<64x128xf32>
    %c0_8 = arith.constant 0 : index
    %c0_9 = arith.constant 0 : index
    %8 = vector.load %arg11[%c0_8, %c0_9] : memref<64x128xf32, #tpu.memory_space<vmem>>, vector<64x128xf32>
    tpu.vector_store %arg11[%c0_8, %c0_9], %7 {strides = array<i32>} : memref<64x128xf32, #tpu.memory_space<vmem>>, vector<64x128xf32>,
    %cst_10 = arith.constant 0.000000e+00 : f32
    %9 = vector.broadcast %cst_10 : f32 to vector<8x32xf32>
    %c0_i32 = arith.constant 0 : i32
    %c8_i32 = arith.constant 8 : i32
    %10 = arith.muli %c0_i32, %c8_i32 : i32
    %11 = tpu.assume_multiple %10, 8 : i32
    %12 = arith.index_cast %11 : i32 to index
    %c0_11 = arith.constant 0 : index
    %13 = vector.load %arg11[%12, %c0_11] : memref<64x128xf32, #tpu.memory_space<vmem>>, vector<8x128xf32>
    %cst_12 = arith.constant dense<0.000000e+00> : vector<8x128xf32>
    %14 = tpu.matmul %9, %1, %cst_12 {dimension_numbers = #tpu.dot_dimension_numbers<[1], [0], [0], [1], [0, 0, 1, 1], [], []>} : vector<8x32xf32>, vector<32x128xf32>, vector<8x128xf32> -> vector<8x128xf32>
    %15 = arith.addf %13, %14 : vector<8x128xf32>
    %16 = arith.negf %15 : vector<8x128xf32>
    %17 = math.exp %16 : vector<8x128xf32>
    %cst_13 = arith.constant 1.000000e+00 : f32
    %18 = vector.broadcast %cst_13 : f32 to vector<8x128xf32>
    %19 = arith.addf %18, %17 : vector<8x128xf32>
    %20 = arith.divf %18, %19 : vector<8x128xf32>
    %21 = math.tanh %15 : vector<8x128xf32>
    %22 = vector.extract_strided_slice %20 {offsets = [0, 0], sizes = [8, 32], strides = [1, 1]} : vector<8x128xf32> to vector<8x32xf32>
    %23 = vector.extract_strided_slice %20 {offsets = [0, 32], sizes = [8, 32], strides = [1, 1]} : vector<8x128xf32> to vector<8x32xf32>
    %24 = vector.extract_strided_slice %21 {offsets = [0, 64], sizes = [8, 32], strides = [1, 1]} : vector<8x128xf32> to vector<8x32xf32>
    %25 = vector.extract_strided_slice %20 {offsets = [0, 96], sizes = [8, 32], strides = [1, 1]} : vector<8x128xf32> to vector<8x32xf32>
    %26 = arith.mulf %23, %9 : vector<8x32xf32>
    %27 = arith.mulf %22, %24 : vector<8x32xf32>
    %28 = arith.addf %26, %27 : vector<8x32xf32>
    %29 = math.tanh %28 : vector<8x32xf32>
    %30 = arith.mulf %25, %29 : vector<8x32xf32>
    %31 = arith.index_cast %11 : i32 to index
    %c0_14 = arith.constant 0 : index
    %32 = vector.load %arg12[%31, %c0_14] : memref<64x32xf32, #tpu.memory_space<vmem>>, vector<8x32xf32>
    tpu.vector_store %arg12[%31, %c0_14], %30 {strides = array<i32>} : memref<64x32xf32, #tpu.memory_space<vmem>>, vector<8x32xf32>,
    %c1_i32 = arith.constant 1 : i32
    %c8_i32_15 = arith.constant 8 : i32
    %33 = arith.muli %c1_i32, %c8_i32_15 : i32
    %34 = tpu.assume_multiple %33, 8 : i32
    %35 = arith.index_cast %34 : i32 to index
    %c0_16 = arith.constant 0 : index
    %36 = vector.load %arg11[%35, %c0_16] : memref<64x128xf32, #tpu.memory_space<vmem>>, vector<8x128xf32>
    %cst_17 = arith.constant dense<0.000000e+00> : vector<8x128xf32>
    %37 = tpu.matmul %30, %1, %cst_17 {dimension_numbers = #tpu.dot_dimension_numbers<[1], [0], [0], [1], [0, 0, 1, 1], [], []>} : vector<8x32xf32>, vector<32x128xf32>, vector<8x128xf32> -> vector<8x128xf32>
    %38 = arith.addf %36, %37 : vector<8x128xf32>
    %39 = arith.negf %38 : vector<8x128xf32>
    %40 = math.exp %39 : vector<8x128xf32>
    %cst_18 = arith.constant 1.000000e+00 : f32
    %41 = vector.broadcast %cst_18 : f32 to vector<8x128xf32>
    %42 = arith.addf %41, %40 : vector<8x128xf32>
    %43 = arith.divf %41, %42 : vector<8x128xf32>
    %44 = math.tanh %38 : vector<8x128xf32>
    %45 = vector.extract_strided_slice %43 {offsets = [0, 0], sizes = [8, 32], strides = [1, 1]} : vector<8x128xf32> to vector<8x32xf32>
    %46 = vector.extract_strided_slice %43 {offsets = [0, 32], sizes = [8, 32], strides = [1, 1]} : vector<8x128xf32> to vector<8x32xf32>
    %47 = vector.extract_strided_slice %44 {offsets = [0, 64], sizes = [8, 32], strides = [1, 1]} : vector<8x128xf32> to vector<8x32xf32>
    %48 = vector.extract_strided_slice %43 {offsets = [0, 96], sizes = [8, 32], strides = [1, 1]} : vector<8x128xf32> to vector<8x32xf32>
    %49 = arith.mulf %46, %28 : vector<8x32xf32>
    %50 = arith.mulf %45, %47 : vector<8x32xf32>
    %51 = arith.addf %49, %50 : vector<8x32xf32>
    %52 = math.tanh %51 : vector<8x32xf32>
    %53 = arith.mulf %48, %52 : vector<8x32xf32>
    %54 = arith.index_cast %34 : i32 to index
    %c0_19 = arith.constant 0 : index
    %55 = vector.load %arg12[%54, %c0_19] : memref<64x32xf32, #tpu.memory_space<vmem>>, vector<8x32xf32>
    tpu.vector_store %arg12[%54, %c0_19], %53 {strides = array<i32>} : memref<64x32xf32, #tpu.memory_space<vmem>>, vector<8x32xf32>,
    %c2_i32 = arith.constant 2 : i32
    %c8_i32_20 = arith.constant 8 : i32
    %56 = arith.muli %c2_i32, %c8_i32_20 : i32
    %57 = tpu.assume_multiple %56, 8 : i32
    %58 = arith.index_cast %57 : i32 to index
    %c0_21 = arith.constant 0 : index
    %59 = vector.load %arg11[%58, %c0_21] : memref<64x128xf32, #tpu.memory_space<vmem>>, vector<8x128xf32>
    %cst_22 = arith.constant dense<0.000000e+00> : vector<8x128xf32>
    %60 = tpu.matmul %53, %1, %cst_22 {dimension_numbers = #tpu.dot_dimension_numbers<[1], [0], [0], [1], [0, 0, 1, 1], [], []>} : vector<8x32xf32>, vector<32x128xf32>, vector<8x128xf32> -> vector<8x128xf32>
    %61 = arith.addf %59, %60 : vector<8x128xf32>
    %62 = arith.negf %61 : vector<8x128xf32>
    %63 = math.exp %62 : vector<8x128xf32>
    %cst_23 = arith.constant 1.000000e+00 : f32
    %64 = vector.broadcast %cst_23 : f32 to vector<8x128xf32>
    %65 = arith.addf %64, %63 : vector<8x128xf32>
    %66 = arith.divf %64, %65 : vector<8x128xf32>
    %67 = math.tanh %61 : vector<8x128xf32>
    %68 = vector.extract_strided_slice %66 {offsets = [0, 0], sizes = [8, 32], strides = [1, 1]} : vector<8x128xf32> to vector<8x32xf32>
    %69 = vector.extract_strided_slice %66 {offsets = [0, 32], sizes = [8, 32], strides = [1, 1]} : vector<8x128xf32> to vector<8x32xf32>
    %70 = vector.extract_strided_slice %67 {offsets = [0, 64], sizes = [8, 32], strides = [1, 1]} : vector<8x128xf32> to vector<8x32xf32>
    %71 = vector.extract_strided_slice %66 {offsets = [0, 96], sizes = [8, 32], strides = [1, 1]} : vector<8x128xf32> to vector<8x32xf32>
    %72 = arith.mulf %69, %51 : vector<8x32xf32>
    %73 = arith.mulf %68, %70 : vector<8x32xf32>
    %74 = arith.addf %72, %73 : vector<8x32xf32>
    %75 = math.tanh %74 : vector<8x32xf32>
    %76 = arith.mulf %71, %75 : vector<8x32xf32>
    %77 = arith.index_cast %57 : i32 to index
    %c0_24 = arith.constant 0 : index
    %78 = vector.load %arg12[%77, %c0_24] : memref<64x32xf32, #tpu.memory_space<vmem>>, vector<8x32xf32>
    tpu.vector_store %arg12[%77, %c0_24], %76 {strides = array<i32>} : memref<64x32xf32, #tpu.memory_space<vmem>>, vector<8x32xf32>,
    %c3_i32 = arith.constant 3 : i32
    %c8_i32_25 = arith.constant 8 : i32
    %79 = arith.muli %c3_i32, %c8_i32_25 : i32
    %80 = tpu.assume_multiple %79, 8 : i32
    %81 = arith.index_cast %80 : i32 to index
    %c0_26 = arith.constant 0 : index
    %82 = vector.load %arg11[%81, %c0_26] : memref<64x128xf32, #tpu.memory_space<vmem>>, vector<8x128xf32>
    %cst_27 = arith.constant dense<0.000000e+00> : vector<8x128xf32>
    %83 = tpu.matmul %76, %1, %cst_27 {dimension_numbers = #tpu.dot_dimension_numbers<[1], [0], [0], [1], [0, 0, 1, 1], [], []>} : vector<8x32xf32>, vector<32x128xf32>, vector<8x128xf32> -> vector<8x128xf32>
    %84 = arith.addf %82, %83 : vector<8x128xf32>
    %85 = arith.negf %84 : vector<8x128xf32>
    %86 = math.exp %85 : vector<8x128xf32>
    %cst_28 = arith.constant 1.000000e+00 : f32
    %87 = vector.broadcast %cst_28 : f32 to vector<8x128xf32>
    %88 = arith.addf %87, %86 : vector<8x128xf32>
    %89 = arith.divf %87, %88 : vector<8x128xf32>
    %90 = math.tanh %84 : vector<8x128xf32>
    %91 = vector.extract_strided_slice %89 {offsets = [0, 0], sizes = [8, 32], strides = [1, 1]} : vector<8x128xf32> to vector<8x32xf32>
    %92 = vector.extract_strided_slice %89 {offsets = [0, 32], sizes = [8, 32], strides = [1, 1]} : vector<8x128xf32> to vector<8x32xf32>
    %93 = vector.extract_strided_slice %90 {offsets = [0, 64], sizes = [8, 32], strides = [1, 1]} : vector<8x128xf32> to vector<8x32xf32>
    %94 = vector.extract_strided_slice %89 {offsets = [0, 96], sizes = [8, 32], strides = [1, 1]} : vector<8x128xf32> to vector<8x32xf32>
    %95 = arith.mulf %92, %74 : vector<8x32xf32>
    %96 = arith.mulf %91, %93 : vector<8x32xf32>
    %97 = arith.addf %95, %96 : vector<8x32xf32>
    %98 = math.tanh %97 : vector<8x32xf32>
    %99 = arith.mulf %94, %98 : vector<8x32xf32>
    %100 = arith.index_cast %80 : i32 to index
    %c0_29 = arith.constant 0 : index
    %101 = vector.load %arg12[%100, %c0_29] : memref<64x32xf32, #tpu.memory_space<vmem>>, vector<8x32xf32>
    tpu.vector_store %arg12[%100, %c0_29], %99 {strides = array<i32>} : memref<64x32xf32, #tpu.memory_space<vmem>>, vector<8x32xf32>,
    %c4_i32 = arith.constant 4 : i32
    %c8_i32_30 = arith.constant 8 : i32
    %102 = arith.muli %c4_i32, %c8_i32_30 : i32
    %103 = tpu.assume_multiple %102, 8 : i32
    %104 = arith.index_cast %103 : i32 to index
    %c0_31 = arith.constant 0 : index
    %105 = vector.load %arg11[%104, %c0_31] : memref<64x128xf32, #tpu.memory_space<vmem>>, vector<8x128xf32>
    %cst_32 = arith.constant dense<0.000000e+00> : vector<8x128xf32>
    %106 = tpu.matmul %99, %1, %cst_32 {dimension_numbers = #tpu.dot_dimension_numbers<[1], [0], [0], [1], [0, 0, 1, 1], [], []>} : vector<8x32xf32>, vector<32x128xf32>, vector<8x128xf32> -> vector<8x128xf32>
    %107 = arith.addf %105, %106 : vector<8x128xf32>
    %108 = arith.negf %107 : vector<8x128xf32>
    %109 = math.exp %108 : vector<8x128xf32>
    %cst_33 = arith.constant 1.000000e+00 : f32
    %110 = vector.broadcast %cst_33 : f32 to vector<8x128xf32>
    %111 = arith.addf %110, %109 : vector<8x128xf32>
    %112 = arith.divf %110, %111 : vector<8x128xf32>
    %113 = math.tanh %107 : vector<8x128xf32>
    %114 = vector.extract_strided_slice %112 {offsets = [0, 0], sizes = [8, 32], strides = [1, 1]} : vector<8x128xf32> to vector<8x32xf32>
    %115 = vector.extract_strided_slice %112 {offsets = [0, 32], sizes = [8, 32], strides = [1, 1]} : vector<8x128xf32> to vector<8x32xf32>
    %116 = vector.extract_strided_slice %113 {offsets = [0, 64], sizes = [8, 32], strides = [1, 1]} : vector<8x128xf32> to vector<8x32xf32>
    %117 = vector.extract_strided_slice %112 {offsets = [0, 96], sizes = [8, 32], strides = [1, 1]} : vector<8x128xf32> to vector<8x32xf32>
    %118 = arith.mulf %115, %97 : vector<8x32xf32>
    %119 = arith.mulf %114, %116 : vector<8x32xf32>
    %120 = arith.addf %118, %119 : vector<8x32xf32>
    %121 = math.tanh %120 : vector<8x32xf32>
    %122 = arith.mulf %117, %121 : vector<8x32xf32>
    %123 = arith.index_cast %103 : i32 to index
    %c0_34 = arith.constant 0 : index
    %124 = vector.load %arg12[%123, %c0_34] : memref<64x32xf32, #tpu.memory_space<vmem>>, vector<8x32xf32>
    tpu.vector_store %arg12[%123, %c0_34], %122 {strides = array<i32>} : memref<64x32xf32, #tpu.memory_space<vmem>>, vector<8x32xf32>,
    %c5_i32 = arith.constant 5 : i32
    %c8_i32_35 = arith.constant 8 : i32
    %125 = arith.muli %c5_i32, %c8_i32_35 : i32
    %126 = tpu.assume_multiple %125, 8 : i32
    %127 = arith.index_cast %126 : i32 to index
    %c0_36 = arith.constant 0 : index
    %128 = vector.load %arg11[%127, %c0_36] : memref<64x128xf32, #tpu.memory_space<vmem>>, vector<8x128xf32>
    %cst_37 = arith.constant dense<0.000000e+00> : vector<8x128xf32>
    %129 = tpu.matmul %122, %1, %cst_37 {dimension_numbers = #tpu.dot_dimension_numbers<[1], [0], [0], [1], [0, 0, 1, 1], [], []>} : vector<8x32xf32>, vector<32x128xf32>, vector<8x128xf32> -> vector<8x128xf32>
    %130 = arith.addf %128, %129 : vector<8x128xf32>
    %131 = arith.negf %130 : vector<8x128xf32>
    %132 = math.exp %131 : vector<8x128xf32>
    %cst_38 = arith.constant 1.000000e+00 : f32
    %133 = vector.broadcast %cst_38 : f32 to vector<8x128xf32>
    %134 = arith.addf %133, %132 : vector<8x128xf32>
    %135 = arith.divf %133, %134 : vector<8x128xf32>
    %136 = math.tanh %130 : vector<8x128xf32>
    %137 = vector.extract_strided_slice %135 {offsets = [0, 0], sizes = [8, 32], strides = [1, 1]} : vector<8x128xf32> to vector<8x32xf32>
    %138 = vector.extract_strided_slice %135 {offsets = [0, 32], sizes = [8, 32], strides = [1, 1]} : vector<8x128xf32> to vector<8x32xf32>
    %139 = vector.extract_strided_slice %136 {offsets = [0, 64], sizes = [8, 32], strides = [1, 1]} : vector<8x128xf32> to vector<8x32xf32>
    %140 = vector.extract_strided_slice %135 {offsets = [0, 96], sizes = [8, 32], strides = [1, 1]} : vector<8x128xf32> to vector<8x32xf32>
    %141 = arith.mulf %138, %120 : vector<8x32xf32>
    %142 = arith.mulf %137, %139 : vector<8x32xf32>
    %143 = arith.addf %141, %142 : vector<8x32xf32>
    %144 = math.tanh %143 : vector<8x32xf32>
    %145 = arith.mulf %140, %144 : vector<8x32xf32>
    %146 = arith.index_cast %126 : i32 to index
    %c0_39 = arith.constant 0 : index
    %147 = vector.load %arg12[%146, %c0_39] : memref<64x32xf32, #tpu.memory_space<vmem>>, vector<8x32xf32>
    tpu.vector_store %arg12[%146, %c0_39], %145 {strides = array<i32>} : memref<64x32xf32, #tpu.memory_space<vmem>>, vector<8x32xf32>,
    %c6_i32 = arith.constant 6 : i32
    %c8_i32_40 = arith.constant 8 : i32
    %148 = arith.muli %c6_i32, %c8_i32_40 : i32
    %149 = tpu.assume_multiple %148, 8 : i32
    %150 = arith.index_cast %149 : i32 to index
    %c0_41 = arith.constant 0 : index
    %151 = vector.load %arg11[%150, %c0_41] : memref<64x128xf32, #tpu.memory_space<vmem>>, vector<8x128xf32>
    %cst_42 = arith.constant dense<0.000000e+00> : vector<8x128xf32>
    %152 = tpu.matmul %145, %1, %cst_42 {dimension_numbers = #tpu.dot_dimension_numbers<[1], [0], [0], [1], [0, 0, 1, 1], [], []>} : vector<8x32xf32>, vector<32x128xf32>, vector<8x128xf32> -> vector<8x128xf32>
    %153 = arith.addf %151, %152 : vector<8x128xf32>
    %154 = arith.negf %153 : vector<8x128xf32>
    %155 = math.exp %154 : vector<8x128xf32>
    %cst_43 = arith.constant 1.000000e+00 : f32
    %156 = vector.broadcast %cst_43 : f32 to vector<8x128xf32>
    %157 = arith.addf %156, %155 : vector<8x128xf32>
    %158 = arith.divf %156, %157 : vector<8x128xf32>
    %159 = math.tanh %153 : vector<8x128xf32>
    %160 = vector.extract_strided_slice %158 {offsets = [0, 0], sizes = [8, 32], strides = [1, 1]} : vector<8x128xf32> to vector<8x32xf32>
    %161 = vector.extract_strided_slice %158 {offsets = [0, 32], sizes = [8, 32], strides = [1, 1]} : vector<8x128xf32> to vector<8x32xf32>
    %162 = vector.extract_strided_slice %159 {offsets = [0, 64], sizes = [8, 32], strides = [1, 1]} : vector<8x128xf32> to vector<8x32xf32>
    %163 = vector.extract_strided_slice %158 {offsets = [0, 96], sizes = [8, 32], strides = [1, 1]} : vector<8x128xf32> to vector<8x32xf32>
    %164 = arith.mulf %161, %143 : vector<8x32xf32>
    %165 = arith.mulf %160, %162 : vector<8x32xf32>
    %166 = arith.addf %164, %165 : vector<8x32xf32>
    %167 = math.tanh %166 : vector<8x32xf32>
    %168 = arith.mulf %163, %167 : vector<8x32xf32>
    %169 = arith.index_cast %149 : i32 to index
    %c0_44 = arith.constant 0 : index
    %170 = vector.load %arg12[%169, %c0_44] : memref<64x32xf32, #tpu.memory_space<vmem>>, vector<8x32xf32>
    tpu.vector_store %arg12[%169, %c0_44], %168 {strides = array<i32>} : memref<64x32xf32, #tpu.memory_space<vmem>>, vector<8x32xf32>,
    %c7_i32 = arith.constant 7 : i32
    %c8_i32_45 = arith.constant 8 : i32
    %171 = arith.muli %c7_i32, %c8_i32_45 : i32
    %172 = tpu.assume_multiple %171, 8 : i32
    %173 = arith.index_cast %172 : i32 to index
    %c0_46 = arith.constant 0 : index
    %174 = vector.load %arg11[%173, %c0_46] : memref<64x128xf32, #tpu.memory_space<vmem>>, vector<8x128xf32>
    %cst_47 = arith.constant dense<0.000000e+00> : vector<8x128xf32>
    %175 = tpu.matmul %168, %1, %cst_47 {dimension_numbers = #tpu.dot_dimension_numbers<[1], [0], [0], [1], [0, 0, 1, 1], [], []>} : vector<8x32xf32>, vector<32x128xf32>, vector<8x128xf32> -> vector<8x128xf32>
    %176 = arith.addf %174, %175 : vector<8x128xf32>
    %177 = arith.negf %176 : vector<8x128xf32>
    %178 = math.exp %177 : vector<8x128xf32>
    %cst_48 = arith.constant 1.000000e+00 : f32
    %179 = vector.broadcast %cst_48 : f32 to vector<8x128xf32>
    %180 = arith.addf %179, %178 : vector<8x128xf32>
    %181 = arith.divf %179, %180 : vector<8x128xf32>
    %182 = math.tanh %176 : vector<8x128xf32>
    %183 = vector.extract_strided_slice %181 {offsets = [0, 0], sizes = [8, 32], strides = [1, 1]} : vector<8x128xf32> to vector<8x32xf32>
    %184 = vector.extract_strided_slice %181 {offsets = [0, 32], sizes = [8, 32], strides = [1, 1]} : vector<8x128xf32> to vector<8x32xf32>
    %185 = vector.extract_strided_slice %182 {offsets = [0, 64], sizes = [8, 32], strides = [1, 1]} : vector<8x128xf32> to vector<8x32xf32>
    %186 = vector.extract_strided_slice %181 {offsets = [0, 96], sizes = [8, 32], strides = [1, 1]} : vector<8x128xf32> to vector<8x32xf32>
    %187 = arith.mulf %184, %166 : vector<8x32xf32>
    %188 = arith.mulf %183, %185 : vector<8x32xf32>
    %189 = arith.addf %187, %188 : vector<8x32xf32>
    %190 = math.tanh %189 : vector<8x32xf32>
    %191 = arith.mulf %186, %190 : vector<8x32xf32>
    %192 = arith.index_cast %172 : i32 to index
    %c0_49 = arith.constant 0 : index
    %193 = vector.load %arg12[%192, %c0_49] : memref<64x32xf32, #tpu.memory_space<vmem>>, vector<8x32xf32>
    tpu.vector_store %arg12[%192, %c0_49], %191 {strides = array<i32>} : memref<64x32xf32, #tpu.memory_space<vmem>>, vector<8x32xf32>,
    %c8_i32_50 = arith.constant 8 : i32
    %c0_51 = arith.constant 0 : index
    %c0_52 = arith.constant 0 : index
    %194 = vector.load %arg5[%c0_51, %c0_52] : memref<32x128xf32, #tpu.memory_space<vmem>>, vector<32x128xf32>
    %c0_53 = arith.constant 0 : index
    %c0_54 = arith.constant 0 : index
    %195 = vector.load %arg6[%c0_53, %c0_54] : memref<32x128xf32, #tpu.memory_space<vmem>>, vector<32x128xf32>
    %c0_55 = arith.constant 0 : index
    %c0_56 = arith.constant 0 : index
    %196 = vector.load %arg7[%c0_55, %c0_56] : memref<1x128xf32, #tpu.memory_space<vmem>>, vector<1x128xf32>
    %c0_57 = arith.constant 0 : index
    %c0_58 = arith.constant 0 : index
    %197 = vector.load %arg12[%c0_57, %c0_58] : memref<64x32xf32, #tpu.memory_space<vmem>>, vector<64x32xf32>
    %cst_59 = arith.constant dense<0.000000e+00> : vector<64x128xf32>
    %198 = tpu.matmul %197, %194, %cst_59 {dimension_numbers = #tpu.dot_dimension_numbers<[1], [0], [0], [1], [0, 0, 1, 1], [], []>} : vector<64x32xf32>, vector<32x128xf32>, vector<64x128xf32> -> vector<64x128xf32>
    %199 = vector.broadcast %196 : vector<1x128xf32> to vector<64x128xf32>
    %200 = arith.addf %198, %199 : vector<64x128xf32>
    %c0_60 = arith.constant 0 : index
    %c0_61 = arith.constant 0 : index
    %201 = vector.load %arg11[%c0_60, %c0_61] : memref<64x128xf32, #tpu.memory_space<vmem>>, vector<64x128xf32>
    tpu.vector_store %arg11[%c0_60, %c0_61], %200 {strides = array<i32>} : memref<64x128xf32, #tpu.memory_space<vmem>>, vector<64x128xf32>,
    %cst_62 = arith.constant 0.000000e+00 : f32
    %202 = vector.broadcast %cst_62 : f32 to vector<8x32xf32>
    %c0_i32_63 = arith.constant 0 : i32
    %c8_i32_64 = arith.constant 8 : i32
    %203 = arith.muli %c0_i32_63, %c8_i32_64 : i32
    %204 = tpu.assume_multiple %203, 8 : i32
    %205 = arith.index_cast %204 : i32 to index
    %c0_65 = arith.constant 0 : index
    %206 = vector.load %arg11[%205, %c0_65] : memref<64x128xf32, #tpu.memory_space<vmem>>, vector<8x128xf32>
    %cst_66 = arith.constant dense<0.000000e+00> : vector<8x128xf32>
    %207 = tpu.matmul %202, %195, %cst_66 {dimension_numbers = #tpu.dot_dimension_numbers<[1], [0], [0], [1], [0, 0, 1, 1], [], []>} : vector<8x32xf32>, vector<32x128xf32>, vector<8x128xf32> -> vector<8x128xf32>
    %208 = arith.addf %206, %207 : vector<8x128xf32>
    %209 = arith.negf %208 : vector<8x128xf32>
    %210 = math.exp %209 : vector<8x128xf32>
    %cst_67 = arith.constant 1.000000e+00 : f32
    %211 = vector.broadcast %cst_67 : f32 to vector<8x128xf32>
    %212 = arith.addf %211, %210 : vector<8x128xf32>
    %213 = arith.divf %211, %212 : vector<8x128xf32>
    %214 = math.tanh %208 : vector<8x128xf32>
    %215 = vector.extract_strided_slice %213 {offsets = [0, 0], sizes = [8, 32], strides = [1, 1]} : vector<8x128xf32> to vector<8x32xf32>
    %216 = vector.extract_strided_slice %213 {offsets = [0, 32], sizes = [8, 32], strides = [1, 1]} : vector<8x128xf32> to vector<8x32xf32>
    %217 = vector.extract_strided_slice %214 {offsets = [0, 64], sizes = [8, 32], strides = [1, 1]} : vector<8x128xf32> to vector<8x32xf32>
    %218 = vector.extract_strided_slice %213 {offsets = [0, 96], sizes = [8, 32], strides = [1, 1]} : vector<8x128xf32> to vector<8x32xf32>
    %219 = arith.mulf %216, %202 : vector<8x32xf32>
    %220 = arith.mulf %215, %217 : vector<8x32xf32>
    %221 = arith.addf %219, %220 : vector<8x32xf32>
    %222 = math.tanh %221 : vector<8x32xf32>
    %223 = arith.mulf %218, %222 : vector<8x32xf32>
    %224 = arith.index_cast %204 : i32 to index
    %c0_68 = arith.constant 0 : index
    %225 = vector.load %arg13[%224, %c0_68] : memref<64x32xf32, #tpu.memory_space<vmem>>, vector<8x32xf32>
    tpu.vector_store %arg13[%224, %c0_68], %223 {strides = array<i32>} : memref<64x32xf32, #tpu.memory_space<vmem>>, vector<8x32xf32>,
    %c1_i32_69 = arith.constant 1 : i32
    %c8_i32_70 = arith.constant 8 : i32
    %226 = arith.muli %c1_i32_69, %c8_i32_70 : i32
    %227 = tpu.assume_multiple %226, 8 : i32
    %228 = arith.index_cast %227 : i32 to index
    %c0_71 = arith.constant 0 : index
    %229 = vector.load %arg11[%228, %c0_71] : memref<64x128xf32, #tpu.memory_space<vmem>>, vector<8x128xf32>
    %cst_72 = arith.constant dense<0.000000e+00> : vector<8x128xf32>
    %230 = tpu.matmul %223, %195, %cst_72 {dimension_numbers = #tpu.dot_dimension_numbers<[1], [0], [0], [1], [0, 0, 1, 1], [], []>} : vector<8x32xf32>, vector<32x128xf32>, vector<8x128xf32> -> vector<8x128xf32>
    %231 = arith.addf %229, %230 : vector<8x128xf32>
    %232 = arith.negf %231 : vector<8x128xf32>
    %233 = math.exp %232 : vector<8x128xf32>
    %cst_73 = arith.constant 1.000000e+00 : f32
    %234 = vector.broadcast %cst_73 : f32 to vector<8x128xf32>
    %235 = arith.addf %234, %233 : vector<8x128xf32>
    %236 = arith.divf %234, %235 : vector<8x128xf32>
    %237 = math.tanh %231 : vector<8x128xf32>
    %238 = vector.extract_strided_slice %236 {offsets = [0, 0], sizes = [8, 32], strides = [1, 1]} : vector<8x128xf32> to vector<8x32xf32>
    %239 = vector.extract_strided_slice %236 {offsets = [0, 32], sizes = [8, 32], strides = [1, 1]} : vector<8x128xf32> to vector<8x32xf32>
    %240 = vector.extract_strided_slice %237 {offsets = [0, 64], sizes = [8, 32], strides = [1, 1]} : vector<8x128xf32> to vector<8x32xf32>
    %241 = vector.extract_strided_slice %236 {offsets = [0, 96], sizes = [8, 32], strides = [1, 1]} : vector<8x128xf32> to vector<8x32xf32>
    %242 = arith.mulf %239, %221 : vector<8x32xf32>
    %243 = arith.mulf %238, %240 : vector<8x32xf32>
    %244 = arith.addf %242, %243 : vector<8x32xf32>
    %245 = math.tanh %244 : vector<8x32xf32>
    %246 = arith.mulf %241, %245 : vector<8x32xf32>
    %247 = arith.index_cast %227 : i32 to index
    %c0_74 = arith.constant 0 : index
    %248 = vector.load %arg13[%247, %c0_74] : memref<64x32xf32, #tpu.memory_space<vmem>>, vector<8x32xf32>
    tpu.vector_store %arg13[%247, %c0_74], %246 {strides = array<i32>} : memref<64x32xf32, #tpu.memory_space<vmem>>, vector<8x32xf32>,
    %c2_i32_75 = arith.constant 2 : i32
    %c8_i32_76 = arith.constant 8 : i32
    %249 = arith.muli %c2_i32_75, %c8_i32_76 : i32
    %250 = tpu.assume_multiple %249, 8 : i32
    %251 = arith.index_cast %250 : i32 to index
    %c0_77 = arith.constant 0 : index
    %252 = vector.load %arg11[%251, %c0_77] : memref<64x128xf32, #tpu.memory_space<vmem>>, vector<8x128xf32>
    %cst_78 = arith.constant dense<0.000000e+00> : vector<8x128xf32>
    %253 = tpu.matmul %246, %195, %cst_78 {dimension_numbers = #tpu.dot_dimension_numbers<[1], [0], [0], [1], [0, 0, 1, 1], [], []>} : vector<8x32xf32>, vector<32x128xf32>, vector<8x128xf32> -> vector<8x128xf32>
    %254 = arith.addf %252, %253 : vector<8x128xf32>
    %255 = arith.negf %254 : vector<8x128xf32>
    %256 = math.exp %255 : vector<8x128xf32>
    %cst_79 = arith.constant 1.000000e+00 : f32
    %257 = vector.broadcast %cst_79 : f32 to vector<8x128xf32>
    %258 = arith.addf %257, %256 : vector<8x128xf32>
    %259 = arith.divf %257, %258 : vector<8x128xf32>
    %260 = math.tanh %254 : vector<8x128xf32>
    %261 = vector.extract_strided_slice %259 {offsets = [0, 0], sizes = [8, 32], strides = [1, 1]} : vector<8x128xf32> to vector<8x32xf32>
    %262 = vector.extract_strided_slice %259 {offsets = [0, 32], sizes = [8, 32], strides = [1, 1]} : vector<8x128xf32> to vector<8x32xf32>
    %263 = vector.extract_strided_slice %260 {offsets = [0, 64], sizes = [8, 32], strides = [1, 1]} : vector<8x128xf32> to vector<8x32xf32>
    %264 = vector.extract_strided_slice %259 {offsets = [0, 96], sizes = [8, 32], strides = [1, 1]} : vector<8x128xf32> to vector<8x32xf32>
    %265 = arith.mulf %262, %244 : vector<8x32xf32>
    %266 = arith.mulf %261, %263 : vector<8x32xf32>
    %267 = arith.addf %265, %266 : vector<8x32xf32>
    %268 = math.tanh %267 : vector<8x32xf32>
    %269 = arith.mulf %264, %268 : vector<8x32xf32>
    %270 = arith.index_cast %250 : i32 to index
    %c0_80 = arith.constant 0 : index
    %271 = vector.load %arg13[%270, %c0_80] : memref<64x32xf32, #tpu.memory_space<vmem>>, vector<8x32xf32>
    tpu.vector_store %arg13[%270, %c0_80], %269 {strides = array<i32>} : memref<64x32xf32, #tpu.memory_space<vmem>>, vector<8x32xf32>,
    %c3_i32_81 = arith.constant 3 : i32
    %c8_i32_82 = arith.constant 8 : i32
    %272 = arith.muli %c3_i32_81, %c8_i32_82 : i32
    %273 = tpu.assume_multiple %272, 8 : i32
    %274 = arith.index_cast %273 : i32 to index
    %c0_83 = arith.constant 0 : index
    %275 = vector.load %arg11[%274, %c0_83] : memref<64x128xf32, #tpu.memory_space<vmem>>, vector<8x128xf32>
    %cst_84 = arith.constant dense<0.000000e+00> : vector<8x128xf32>
    %276 = tpu.matmul %269, %195, %cst_84 {dimension_numbers = #tpu.dot_dimension_numbers<[1], [0], [0], [1], [0, 0, 1, 1], [], []>} : vector<8x32xf32>, vector<32x128xf32>, vector<8x128xf32> -> vector<8x128xf32>
    %277 = arith.addf %275, %276 : vector<8x128xf32>
    %278 = arith.negf %277 : vector<8x128xf32>
    %279 = math.exp %278 : vector<8x128xf32>
    %cst_85 = arith.constant 1.000000e+00 : f32
    %280 = vector.broadcast %cst_85 : f32 to vector<8x128xf32>
    %281 = arith.addf %280, %279 : vector<8x128xf32>
    %282 = arith.divf %280, %281 : vector<8x128xf32>
    %283 = math.tanh %277 : vector<8x128xf32>
    %284 = vector.extract_strided_slice %282 {offsets = [0, 0], sizes = [8, 32], strides = [1, 1]} : vector<8x128xf32> to vector<8x32xf32>
    %285 = vector.extract_strided_slice %282 {offsets = [0, 32], sizes = [8, 32], strides = [1, 1]} : vector<8x128xf32> to vector<8x32xf32>
    %286 = vector.extract_strided_slice %283 {offsets = [0, 64], sizes = [8, 32], strides = [1, 1]} : vector<8x128xf32> to vector<8x32xf32>
    %287 = vector.extract_strided_slice %282 {offsets = [0, 96], sizes = [8, 32], strides = [1, 1]} : vector<8x128xf32> to vector<8x32xf32>
    %288 = arith.mulf %285, %267 : vector<8x32xf32>
    %289 = arith.mulf %284, %286 : vector<8x32xf32>
    %290 = arith.addf %288, %289 : vector<8x32xf32>
    %291 = math.tanh %290 : vector<8x32xf32>
    %292 = arith.mulf %287, %291 : vector<8x32xf32>
    %293 = arith.index_cast %273 : i32 to index
    %c0_86 = arith.constant 0 : index
    %294 = vector.load %arg13[%293, %c0_86] : memref<64x32xf32, #tpu.memory_space<vmem>>, vector<8x32xf32>
    tpu.vector_store %arg13[%293, %c0_86], %292 {strides = array<i32>} : memref<64x32xf32, #tpu.memory_space<vmem>>, vector<8x32xf32>,
    %c4_i32_87 = arith.constant 4 : i32
    %c8_i32_88 = arith.constant 8 : i32
    %295 = arith.muli %c4_i32_87, %c8_i32_88 : i32
    %296 = tpu.assume_multiple %295, 8 : i32
    %297 = arith.index_cast %296 : i32 to index
    %c0_89 = arith.constant 0 : index
    %298 = vector.load %arg11[%297, %c0_89] : memref<64x128xf32, #tpu.memory_space<vmem>>, vector<8x128xf32>
    %cst_90 = arith.constant dense<0.000000e+00> : vector<8x128xf32>
    %299 = tpu.matmul %292, %195, %cst_90 {dimension_numbers = #tpu.dot_dimension_numbers<[1], [0], [0], [1], [0, 0, 1, 1], [], []>} : vector<8x32xf32>, vector<32x128xf32>, vector<8x128xf32> -> vector<8x128xf32>
    %300 = arith.addf %298, %299 : vector<8x128xf32>
    %301 = arith.negf %300 : vector<8x128xf32>
    %302 = math.exp %301 : vector<8x128xf32>
    %cst_91 = arith.constant 1.000000e+00 : f32
    %303 = vector.broadcast %cst_91 : f32 to vector<8x128xf32>
    %304 = arith.addf %303, %302 : vector<8x128xf32>
    %305 = arith.divf %303, %304 : vector<8x128xf32>
    %306 = math.tanh %300 : vector<8x128xf32>
    %307 = vector.extract_strided_slice %305 {offsets = [0, 0], sizes = [8, 32], strides = [1, 1]} : vector<8x128xf32> to vector<8x32xf32>
    %308 = vector.extract_strided_slice %305 {offsets = [0, 32], sizes = [8, 32], strides = [1, 1]} : vector<8x128xf32> to vector<8x32xf32>
    %309 = vector.extract_strided_slice %306 {offsets = [0, 64], sizes = [8, 32], strides = [1, 1]} : vector<8x128xf32> to vector<8x32xf32>
    %310 = vector.extract_strided_slice %305 {offsets = [0, 96], sizes = [8, 32], strides = [1, 1]} : vector<8x128xf32> to vector<8x32xf32>
    %311 = arith.mulf %308, %290 : vector<8x32xf32>
    %312 = arith.mulf %307, %309 : vector<8x32xf32>
    %313 = arith.addf %311, %312 : vector<8x32xf32>
    %314 = math.tanh %313 : vector<8x32xf32>
    %315 = arith.mulf %310, %314 : vector<8x32xf32>
    %316 = arith.index_cast %296 : i32 to index
    %c0_92 = arith.constant 0 : index
    %317 = vector.load %arg13[%316, %c0_92] : memref<64x32xf32, #tpu.memory_space<vmem>>, vector<8x32xf32>
    tpu.vector_store %arg13[%316, %c0_92], %315 {strides = array<i32>} : memref<64x32xf32, #tpu.memory_space<vmem>>, vector<8x32xf32>,
    %c5_i32_93 = arith.constant 5 : i32
    %c8_i32_94 = arith.constant 8 : i32
    %318 = arith.muli %c5_i32_93, %c8_i32_94 : i32
    %319 = tpu.assume_multiple %318, 8 : i32
    %320 = arith.index_cast %319 : i32 to index
    %c0_95 = arith.constant 0 : index
    %321 = vector.load %arg11[%320, %c0_95] : memref<64x128xf32, #tpu.memory_space<vmem>>, vector<8x128xf32>
    %cst_96 = arith.constant dense<0.000000e+00> : vector<8x128xf32>
    %322 = tpu.matmul %315, %195, %cst_96 {dimension_numbers = #tpu.dot_dimension_numbers<[1], [0], [0], [1], [0, 0, 1, 1], [], []>} : vector<8x32xf32>, vector<32x128xf32>, vector<8x128xf32> -> vector<8x128xf32>
    %323 = arith.addf %321, %322 : vector<8x128xf32>
    %324 = arith.negf %323 : vector<8x128xf32>
    %325 = math.exp %324 : vector<8x128xf32>
    %cst_97 = arith.constant 1.000000e+00 : f32
    %326 = vector.broadcast %cst_97 : f32 to vector<8x128xf32>
    %327 = arith.addf %326, %325 : vector<8x128xf32>
    %328 = arith.divf %326, %327 : vector<8x128xf32>
    %329 = math.tanh %323 : vector<8x128xf32>
    %330 = vector.extract_strided_slice %328 {offsets = [0, 0], sizes = [8, 32], strides = [1, 1]} : vector<8x128xf32> to vector<8x32xf32>
    %331 = vector.extract_strided_slice %328 {offsets = [0, 32], sizes = [8, 32], strides = [1, 1]} : vector<8x128xf32> to vector<8x32xf32>
    %332 = vector.extract_strided_slice %329 {offsets = [0, 64], sizes = [8, 32], strides = [1, 1]} : vector<8x128xf32> to vector<8x32xf32>
    %333 = vector.extract_strided_slice %328 {offsets = [0, 96], sizes = [8, 32], strides = [1, 1]} : vector<8x128xf32> to vector<8x32xf32>
    %334 = arith.mulf %331, %313 : vector<8x32xf32>
    %335 = arith.mulf %330, %332 : vector<8x32xf32>
    %336 = arith.addf %334, %335 : vector<8x32xf32>
    %337 = math.tanh %336 : vector<8x32xf32>
    %338 = arith.mulf %333, %337 : vector<8x32xf32>
    %339 = arith.index_cast %319 : i32 to index
    %c0_98 = arith.constant 0 : index
    %340 = vector.load %arg13[%339, %c0_98] : memref<64x32xf32, #tpu.memory_space<vmem>>, vector<8x32xf32>
    tpu.vector_store %arg13[%339, %c0_98], %338 {strides = array<i32>} : memref<64x32xf32, #tpu.memory_space<vmem>>, vector<8x32xf32>,
    %c6_i32_99 = arith.constant 6 : i32
    %c8_i32_100 = arith.constant 8 : i32
    %341 = arith.muli %c6_i32_99, %c8_i32_100 : i32
    %342 = tpu.assume_multiple %341, 8 : i32
    %343 = arith.index_cast %342 : i32 to index
    %c0_101 = arith.constant 0 : index
    %344 = vector.load %arg11[%343, %c0_101] : memref<64x128xf32, #tpu.memory_space<vmem>>, vector<8x128xf32>
    %cst_102 = arith.constant dense<0.000000e+00> : vector<8x128xf32>
    %345 = tpu.matmul %338, %195, %cst_102 {dimension_numbers = #tpu.dot_dimension_numbers<[1], [0], [0], [1], [0, 0, 1, 1], [], []>} : vector<8x32xf32>, vector<32x128xf32>, vector<8x128xf32> -> vector<8x128xf32>
    %346 = arith.addf %344, %345 : vector<8x128xf32>
    %347 = arith.negf %346 : vector<8x128xf32>
    %348 = math.exp %347 : vector<8x128xf32>
    %cst_103 = arith.constant 1.000000e+00 : f32
    %349 = vector.broadcast %cst_103 : f32 to vector<8x128xf32>
    %350 = arith.addf %349, %348 : vector<8x128xf32>
    %351 = arith.divf %349, %350 : vector<8x128xf32>
    %352 = math.tanh %346 : vector<8x128xf32>
    %353 = vector.extract_strided_slice %351 {offsets = [0, 0], sizes = [8, 32], strides = [1, 1]} : vector<8x128xf32> to vector<8x32xf32>
    %354 = vector.extract_strided_slice %351 {offsets = [0, 32], sizes = [8, 32], strides = [1, 1]} : vector<8x128xf32> to vector<8x32xf32>
    %355 = vector.extract_strided_slice %352 {offsets = [0, 64], sizes = [8, 32], strides = [1, 1]} : vector<8x128xf32> to vector<8x32xf32>
    %356 = vector.extract_strided_slice %351 {offsets = [0, 96], sizes = [8, 32], strides = [1, 1]} : vector<8x128xf32> to vector<8x32xf32>
    %357 = arith.mulf %354, %336 : vector<8x32xf32>
    %358 = arith.mulf %353, %355 : vector<8x32xf32>
    %359 = arith.addf %357, %358 : vector<8x32xf32>
    %360 = math.tanh %359 : vector<8x32xf32>
    %361 = arith.mulf %356, %360 : vector<8x32xf32>
    %362 = arith.index_cast %342 : i32 to index
    %c0_104 = arith.constant 0 : index
    %363 = vector.load %arg13[%362, %c0_104] : memref<64x32xf32, #tpu.memory_space<vmem>>, vector<8x32xf32>
    tpu.vector_store %arg13[%362, %c0_104], %361 {strides = array<i32>} : memref<64x32xf32, #tpu.memory_space<vmem>>, vector<8x32xf32>,
    %c7_i32_105 = arith.constant 7 : i32
    %c8_i32_106 = arith.constant 8 : i32
    %364 = arith.muli %c7_i32_105, %c8_i32_106 : i32
    %365 = tpu.assume_multiple %364, 8 : i32
    %366 = arith.index_cast %365 : i32 to index
    %c0_107 = arith.constant 0 : index
    %367 = vector.load %arg11[%366, %c0_107] : memref<64x128xf32, #tpu.memory_space<vmem>>, vector<8x128xf32>
    %cst_108 = arith.constant dense<0.000000e+00> : vector<8x128xf32>
    %368 = tpu.matmul %361, %195, %cst_108 {dimension_numbers = #tpu.dot_dimension_numbers<[1], [0], [0], [1], [0, 0, 1, 1], [], []>} : vector<8x32xf32>, vector<32x128xf32>, vector<8x128xf32> -> vector<8x128xf32>
    %369 = arith.addf %367, %368 : vector<8x128xf32>
    %370 = arith.negf %369 : vector<8x128xf32>
    %371 = math.exp %370 : vector<8x128xf32>
    %cst_109 = arith.constant 1.000000e+00 : f32
    %372 = vector.broadcast %cst_109 : f32 to vector<8x128xf32>
    %373 = arith.addf %372, %371 : vector<8x128xf32>
    %374 = arith.divf %372, %373 : vector<8x128xf32>
    %375 = math.tanh %369 : vector<8x128xf32>
    %376 = vector.extract_strided_slice %374 {offsets = [0, 0], sizes = [8, 32], strides = [1, 1]} : vector<8x128xf32> to vector<8x32xf32>
    %377 = vector.extract_strided_slice %374 {offsets = [0, 32], sizes = [8, 32], strides = [1, 1]} : vector<8x128xf32> to vector<8x32xf32>
    %378 = vector.extract_strided_slice %375 {offsets = [0, 64], sizes = [8, 32], strides = [1, 1]} : vector<8x128xf32> to vector<8x32xf32>
    %379 = vector.extract_strided_slice %374 {offsets = [0, 96], sizes = [8, 32], strides = [1, 1]} : vector<8x128xf32> to vector<8x32xf32>
    %380 = arith.mulf %377, %359 : vector<8x32xf32>
    %381 = arith.mulf %376, %378 : vector<8x32xf32>
    %382 = arith.addf %380, %381 : vector<8x32xf32>
    %383 = math.tanh %382 : vector<8x32xf32>
    %384 = arith.mulf %379, %383 : vector<8x32xf32>
    %385 = arith.index_cast %365 : i32 to index
    %c0_110 = arith.constant 0 : index
    %386 = vector.load %arg13[%385, %c0_110] : memref<64x32xf32, #tpu.memory_space<vmem>>, vector<8x32xf32>
    tpu.vector_store %arg13[%385, %c0_110], %384 {strides = array<i32>} : memref<64x32xf32, #tpu.memory_space<vmem>>, vector<8x32xf32>,
    %c8_i32_111 = arith.constant 8 : i32
    %c0_112 = arith.constant 0 : index
    %c0_113 = arith.constant 0 : index
    %387 = vector.load %arg13[%c0_112, %c0_113] : memref<64x32xf32, #tpu.memory_space<vmem>>, vector<64x32xf32>
    %c0_114 = arith.constant 0 : index
    %c0_115 = arith.constant 0 : index
    %388 = vector.load %arg8[%c0_114, %c0_115] : memref<32x128xf32, #tpu.memory_space<vmem>>, vector<32x128xf32>
    %cst_116 = arith.constant dense<0.000000e+00> : vector<64x128xf32>
    %389 = tpu.matmul %387, %388, %cst_116 {dimension_numbers = #tpu.dot_dimension_numbers<[1], [0], [0], [1], [0, 0, 1, 1], [], []>} : vector<64x32xf32>, vector<32x128xf32>, vector<64x128xf32> -> vector<64x128xf32>
    %c0_117 = arith.constant 0 : index
    %c0_118 = arith.constant 0 : index
    %390 = vector.load %arg9[%c0_117, %c0_118] : memref<1x128xf32, #tpu.memory_space<vmem>>, vector<1x128xf32>
    %391 = vector.broadcast %390 : vector<1x128xf32> to vector<64x128xf32>
    %392 = arith.addf %389, %391 : vector<64x128xf32>
    %c0_119 = arith.constant 0 : index
    %c0_120 = arith.constant 0 : index
    %c0_121 = arith.constant 0 : index
    %393 = vector.load %arg10[%c0_119, %c0_120, %c0_121] : memref<1x64x128xf32, #tpu.memory_space<vmem>>, vector<1x64x128xf32>
    %394 = vector.shape_cast %393 : vector<1x64x128xf32> to vector<64x128xf32>
    %395 = vector.shape_cast %392 : vector<64x128xf32> to vector<1x64x128xf32>
    tpu.vector_store %arg10[%c0_119, %c0_120, %c0_121], %395 {strides = array<i32>} : memref<1x64x128xf32, #tpu.memory_space<vmem>>, vector<1x64x128xf32>,
    return
  }
  func.func @transform_0(%arg0: i32) -> (i32, i32, i32) {
    %c0_i32 = arith.constant 0 : i32
    %c0_i32_0 = arith.constant 0 : i32
    %c0_i32_1 = arith.constant 0 : i32
    return %arg0, %c0_i32, %c0_i32_0 : i32, i32, i32
  }
  func.func @transform_1(%arg0: i32) -> (i32, i32) {
    %c0_i32 = arith.constant 0 : i32
    %c0_i32_0 = arith.constant 0 : i32
    %c0_i32_1 = arith.constant 0 : i32
    return %c0_i32, %c0_i32_0 : i32, i32
  }
  func.func @transform_2(%arg0: i32) -> (i32, i32) {
    %c0_i32 = arith.constant 0 : i32
    %c0_i32_0 = arith.constant 0 : i32
    %c0_i32_1 = arith.constant 0 : i32
    return %c0_i32, %c0_i32_0 : i32, i32
  }
  func.func @transform_3(%arg0: i32) -> (i32, i32) {
    %c0_i32 = arith.constant 0 : i32
    %c0_i32_0 = arith.constant 0 : i32
    %c0_i32_1 = arith.constant 0 : i32
    return %c0_i32, %c0_i32_0 : i32, i32
  }
  func.func @transform_4(%arg0: i32) -> (i32, i32) {
    %c0_i32 = arith.constant 0 : i32
    %c0_i32_0 = arith.constant 0 : i32
    %c0_i32_1 = arith.constant 0 : i32
    return %c0_i32, %c0_i32_0 : i32, i32
  }
  func.func @transform_5(%arg0: i32) -> (i32, i32) {
    %c0_i32 = arith.constant 0 : i32
    %c0_i32_0 = arith.constant 0 : i32
    %c0_i32_1 = arith.constant 0 : i32
    return %c0_i32, %c0_i32_0 : i32, i32
  }
  func.func @transform_6(%arg0: i32) -> (i32, i32) {
    %c0_i32 = arith.constant 0 : i32
    %c0_i32_0 = arith.constant 0 : i32
    %c0_i32_1 = arith.constant 0 : i32
    return %c0_i32, %c0_i32_0 : i32, i32
  }
  func.func @transform_7(%arg0: i32) -> (i32, i32) {
    %c0_i32 = arith.constant 0 : i32
    %c0_i32_0 = arith.constant 0 : i32
    %c0_i32_1 = arith.constant 0 : i32
    return %c0_i32, %c0_i32_0 : i32, i32
  }
  func.func @transform_8(%arg0: i32) -> (i32, i32) {
    %c0_i32 = arith.constant 0 : i32
    %c0_i32_0 = arith.constant 0 : i32
    %c0_i32_1 = arith.constant 0 : i32
    return %c0_i32, %c0_i32_0 : i32, i32
  }
  func.func @transform_9(%arg0: i32) -> (i32, i32, i32) {
    %c0_i32 = arith.constant 0 : i32
    %c0_i32_0 = arith.constant 0 : i32
    %c0_i32_1 = arith.constant 0 : i32
    return %arg0, %c0_i32, %c0_i32_0 : i32, i32, i32
  }
}

</mosaic_0001>

<bundles_post_ra>
// kernel: lstm_predictor_forward.1
= control target key start
LH: loop header
LB: loop body
LE: loop exit
PB: predicated region body
PF: predicated region fallthrough
CT: control target
= control target key end

     0   :  { %vm53_vm0 = vcmask 130048   ;;  %v2719_v6 = vmov 0.0   ;;  %vm2720_vm1 = vmmov 0   ;;  %s2721_s12 = smov 64   ;;  %vm192_vm2 = vcmask 261120   ;;  %s3245_s1 = inlined_call_operand.vmem [shape: f32[16,128], index: 1, kind: input, shape index: {}]   ;;  %s3246_s0 = inlined_call_operand.vmem [shape: f32[1,64,16], index: 0, kind: input, shape index: {}]   ;;  %s3247_s2 = inlined_call_operand.vmem [shape: f32[32,128], index: 2, kind: input, shape index: {}]   ;;  %s3248_s3 = inlined_call_operand.vmem [shape: f32[1,128], index: 3, kind: input, shape index: {}]   ;;  %s3249_s4 = inlined_call_operand.vmem [shape: f32[32,128], index: 4, kind: input, shape index: {}]   ;;  %s3250_s5 = inlined_call_operand.vmem [shape: f32[32,128], index: 5, kind: input, shape index: {}]   ;;  %s3251_s6 = inlined_call_operand.vmem [shape: f32[1,128], index: 6, kind: input, shape index: {}]   ;;  %s3252_s7 = inlined_call_operand.vmem [shape: f32[32,128], index: 7, kind: input, shape index: {}]   ;;  %s3253_s8 = inlined_call_operand.vmem [shape: f32[1,128], index: 8, kind: input, shape index: {}]   ;;  %s3254_s9 = inlined_call_operand.vmem [shape: f32[1,64,128], index: 9, kind: output, shape index: {}]  }
   0x1   :  { %v33_v0 = vld [vmem:[%s3245_s1 + $0x8] sm:$0xff]  ;;  %v32_v1 = vld [vmem:[%s3245_s1] sm:$0xff]  ;;  %v2789_v4 = vld [vmem:[%s3247_s2 + $0x18] sm:$0xff] }
   0x2   :  { %v43_v2 = vld [vmem:[%s3246_s0 + $0x20] sm:$0xff]  ;;  %2583 = vmatprep.subr.mxu1 %v33_v0  ;;  %2351 = vmatprep.subr.mxu0 %v33_v0  ;;  %v44_v3 = vld [vmem:[%s3246_s0 + $0x28] sm:$0xff]  ;;  %v45_v8 = vld [vmem:[%s3246_s0 + $0x30] sm:$0xff] }
   0x3   :  { %2585 = vmatpush3.msra.mxu1 %v33_v0  ;;  %2361 = vmatprep.mubr.msk.f32.mxu1 %vm53_vm0, %v43_v2  ;;  %v39_v5 = vld [vmem:[%s3246_s0] sm:$0xff]  ;;  %v40_v7 = vld [vmem:[%s3246_s0 + $0x8] sm:$0xff]  ;;  %v2806_v9 = vld [vmem:[%s3247_s2 + $0x10] sm:$0xff] }
   0x4   :  { %2584 = vmatprep.subr.mxu1 %v32_v1  ;;  %2352 = vmatpush3.msra.mxu0 %v33_v0  ;;  %v46_v10 = vld [vmem:[%s3246_s0 + $0x38] sm:$0xff]  ;;  %v2818_v11 = vld [vmem:[%s3247_s2 + $0x8] sm:$0xff]  ;;  %v2827_v12 = vld [vmem:[%s3247_s2] sm:$0xff] }
   0x5   :  { %2586 = vmatpush3.msra.mxu1 %v32_v1  ;;  %2353 = vmatprep.subr.mxu0 %v32_v1  ;;  %v2863_v18 = vld [vmem:[%s3248_s3] ss:$0 sm:$0xff]  ;;  %s2722_s3 = smov 32   ;;  %v41_v52 = vld [vmem:[%s3246_s0 + $0x10] sm:$0xff]  ;;  %v42_v53 = vld [vmem:[%s3246_s0 + $0x18] sm:$0xff] }
   0x6   :  { %2362 = vmatmul.mubr.msk.f32.vlgmr.msra.gmra.mxu1 %vm53_vm0, %v44_v3  ;;  %2367 = vmatprep.subr.mxu1 %v2719_v6 }
   0x7   :  { %2368 = vmatpush3.msra.mxu1 %v2789_v4  ;;  %2354 = vmatpush3.msra.mxu0 %v32_v1 }
   0x8   :  { %2355 = vmatprep.mubr.msk.f32.mxu0 %vm53_vm0, %v39_v5  ;;  %2369 = vmatprep.subr.mxu1 %v2719_v6 }
   0x9   :  { %2356 = vmatmul.mubr.msk.f32.vlgmr.msra.gmra.mxu0 %vm53_vm0, %v40_v7  ;;  %2364 = vmatprep.mubr.msk.f32.mxu1 %vm53_vm0, %v45_v8 }
   0xa   :  { %2370 = vmatpush3.msra.mxu1 %v2806_v9  ;;  %2389 = vmatprep.subr.mxu0 %v2719_v6 }
   0xb   :  { %2365 = vmatmul.mubr.msk.f32.gmra.mxu1 %vm53_vm0, %v46_v10  ;;  %2371 = vmatprep.subr.mxu1 %v2719_v6 }
   0xc   :  { %2372 = vmatpush3.msra.mxu1 %v2818_v11  ;;  %2375 = vmatprep.mubr.msk.f32.mxu1 %vm2720_vm1, %v2719_v6 }
   0xd   :  { %2373 = vmatprep.subr.mxu1 %v2719_v6  ;;  %2390 = vmatpush3.msra.mxu0 %v2789_v4 }
   0xe   :  { %2374 = vmatpush3.msra.mxu1 %v2827_v12  ;;  %2391 = vmatprep.subr.mxu0 %v2719_v6 }
   0xf   :  { %2376 = vmatmul.mubr.f32.vlgmr.msra.gmra.mxu1 %v2719_v6  ;;  %2378 = vmatprep.subr.mxu1 %v2719_v6 }
  0x10   :  { %2379 = vmatpush3.msra.mxu1 %v2789_v4  ;;  %2386 = vmatprep.mubr.msk.f32.mxu1 %vm2720_vm1, %v2719_v6 }
  0x11   :  { %2380 = vmatprep.subr.mxu1 %v2719_v6  ;;  %2392 = vmatpush3.msra.mxu0 %v2806_v9 }
  0x12   :  { %2381 = vmatpush3.msra.mxu1 %v2806_v9  ;;  %2393 = vmatprep.subr.mxu0 %v2719_v6 }
  0x13   :  { %2382 = vmatprep.subr.mxu1 %v2719_v6  ;;  %2394 = vmatpush3.msra.mxu0 %v2818_v11 }
  0x14   :  { %2383 = vmatpush3.msra.mxu1 %v2818_v11  ;;  %2395 = vmatprep.subr.mxu0 %v2719_v6 }
  0x15   :  { %2384 = vmatprep.subr.mxu1 %v2719_v6  ;;  %2396 = vmatpush3.msra.mxu0 %v2827_v12 }
  0x16   :  { %2385 = vmatpush3.msra.mxu1 %v2827_v12  ;;  %2411 = vmatprep.subr.mxu0 %v2719_v6 }
  0x17   :  { %2400 = vmatprep.subr.mxu1 %v2719_v6  ;;  %2358 = vmatprep.mubr.msk.f32.mxu0 %vm53_vm0, %v41_v52 }
  0x18   :  { %2359 = vmatmul.mubr.msk.f32.gmra.mxu0 %vm53_vm0, %v42_v53 }
  0x19   :  { %2397 = vmatprep.mubr.msk.f32.mxu0 %vm2720_vm1, %v2719_v6 }
  0xc6   :  { %v2854_v13 = vpop.f32.mrf.mxu1 }
  0xc8   :  { %v2856_v14 = vpop.f32.mrf.mxu1 }
  0xc9   :  { %v2357_v15 = vpop.f32.mrf.mxu0 }
  0xca   :  { %v150_v38 = vadd.f32 %v2357_v15, %v2863_v18 }
  0xcb   :  { %v2858_v16 = vpop.f32.mrf.mxu1  ;;  %v144_v17 = vpop.f32.mrf.mxu0 }
  0xcc   :  { %v145_v20 = vadd.f32 %v2863_v18, %v144_v17 }
  0xcd   :  { %v2865_v19 = vpop.f32.mrf.mxu1 }
  0xcf   :  { %v262_v21 = vpop.f32.mrf.mxu1 }
  0xd0   :  { %v266_v22 = vadd.f32 %v262_v21, %v145_v20 }
  0xd1   :  { %v2377_v23 = vpop.f32.mrf.mxu1 }
  0xd2   :  { %2591 = vtanh.f32 %v266_v22  ;;  %v2189_v25 = vmul.f32 -1.442695, %v266_v22 }
  0xd4   :  { %2593 = vpow2.f32 %v2189_v25 }
  0xd8   :  { %v2360_v58 = vpop.f32.mrf.mxu0 }
  0xda   :  { %v154_v59 = vpop.f32.mrf.mxu0 }
  0xdb   :  { %v155_v60 = vadd.f32 %v2863_v18, %v154_v59 }
  0xdf   :  { %v2592_v24 = vpop.eup %2591 }
  0xe0   :  { %276 = vrot.lane.b32.xlu0 %v2592_v24, %s2721_s12  ;;  %v160_v24 = vadd.f32 %v2360_v58, %v2863_v18 }
  0xe1   :  { %v2594_v26 = vpop.eup %2593 }
  0xe2   :  { %v270_v27 = vadd.f32 1.0, %v2594_v26 }
  0xe4   :  { %2595 = vrcp.f32 %v270_v27 }
  0xf1   :  { %v2596_v28 = vpop.eup %2595 }
  0xf2   :  { %v274_v31 = vmul.f32 0.0, %v2596_v28 }
 0x152   :  { %v277_v29 = vpop.permute.xlu0 %276 }
 0x153   :  { %v279_v30 = vmul.f32 %v2596_v28, %v277_v29 }
 0x155   :  { %281 = vrot.lane.b32.xlu0 %v279_v30, %s2722_s3 }
 0x1c7   :  { %v282_v32 = vpop.permute.xlu0 %281 }
 0x1c8   :  { %v284_v33 = vadd.f32 %v282_v32, %v274_v31 }
 0x1ca   :  { %2597 = vtanh.f32 %v284_v33 }
 0x1d7   :  { %v2598_v34 = vpop.eup %2597 }
 0x1d8   :  { %287 = vrot.lane.b32.xlu1 %v2598_v34, %s2721_s12 }
 0x24a   :  { %v288_v35 = vpop.permute.xlu1 %287 }
 0x24b   :  { %v290_v36 = vmul.f32 %v2596_v28, %v288_v35 }
 0x24d   :  { %292 = vrot.lane.b32.xlu1 %v290_v36, %s2722_s3 }
 0x2bf   :  { %v293_v37 = vpop.permute.xlu1 %292 }
 0x2c0   :  { %295 = vst.msk [vmem:[#allocation3] sm:$0xff] %vm192_vm2, %v293_v37  ;;  %2387 = vmatmul.mubr.msk.f32.vlgmr.msra.gmra.mxu1 %vm192_vm2, %v293_v37 }
 0x2c1   :  { %2401 = vmatpush3.msra.mxu1 %v2789_v4  ;;  %2408 = vmatprep.mubr.msk.f32.mxu1 %vm2720_vm1, %v2719_v6 }
 0x2c2   :  { %2402 = vmatprep.subr.mxu1 %v2719_v6 }
 0x2c3   :  { %2403 = vmatpush3.msra.mxu1 %v2806_v9 }
 0x2c4   :  { %2404 = vmatprep.subr.mxu1 %v2719_v6 }
 0x2c5   :  { %2405 = vmatpush3.msra.mxu1 %v2818_v11 }
 0x2c6   :  { %2406 = vmatprep.subr.mxu1 %v2719_v6 }
 0x2c7   :  { %2407 = vmatpush3.msra.mxu1 %v2827_v12 }
 0x2c8   :  { %2422 = vmatprep.subr.mxu1 %v2719_v6 }
 0x380   :  { %v366_v39 = vpop.f32.mrf.mxu1 }
 0x381   :  { %v370_v40 = vadd.f32 %v366_v39, %v150_v38 }
 0x382   :  { %v2388_v41 = vpop.f32.mrf.mxu1 }
 0x383   :  { %2599 = vtanh.f32 %v370_v40  ;;  %v2191_v43 = vmul.f32 -1.442695, %v370_v40 }
 0x385   :  { %2601 = vpow2.f32 %v2191_v43 }
 0x390   :  { %v2600_v42 = vpop.eup %2599 }
 0x391   :  { %380 = vrot.lane.b32.xlu0 %v2600_v42, %s2721_s12  ;;  %v165_v42 = vadd.f32 %v2863_v18, %v2856_v14 }
 0x392   :  { %v2602_v44 = vpop.eup %2601 }
 0x393   :  { %v374_v45 = vadd.f32 1.0, %v2602_v44 }
 0x395   :  { %2603 = vrcp.f32 %v374_v45 }
 0x3a2   :  { %v2604_v46 = vpop.eup %2603 }
 0x3a3   :  { %v378_v49 = vmul.f32 %v2604_v46, %v284_v33 }
 0x403   :  { %v381_v47 = vpop.permute.xlu0 %380 }
 0x404   :  { %v383_v48 = vmul.f32 %v2604_v46, %v381_v47 }
 0x406   :  { %385 = vrot.lane.b32.xlu1 %v383_v48, %s2722_s3 }
 0x478   :  { %v386_v50 = vpop.permute.xlu1 %385 }
 0x479   :  { %v388_v51 = vadd.f32 %v386_v50, %v378_v49 }
 0x47b   :  { %2605 = vtanh.f32 %v388_v51 }
 0x488   :  { %v2606_v54 = vpop.eup %2605 }
 0x489   :  { %391 = vrot.lane.b32.xlu0 %v2606_v54, %s2721_s12 }
 0x4fb   :  { %v392_v55 = vpop.permute.xlu0 %391 }
 0x4fc   :  { %v394_v56 = vmul.f32 %v2604_v46, %v392_v55 }
 0x4fe   :  { %396 = vrot.lane.b32.xlu1 %v394_v56, %s2722_s3 }
 0x570   :  { %v397_v57 = vpop.permute.xlu1 %396 }
 0x571   :  { %400 = vst.msk [vmem:[#allocation3 + $0x8] sm:$0xff] %vm192_vm2, %v397_v57  ;;  %2398 = vmatmul.mubr.msk.f32.vlgmr.msra.gmra.mxu0 %vm192_vm2, %v397_v57 }
 0x572   :  { %2412 = vmatpush3.msra.mxu0 %v2789_v4  ;;  %2419 = vmatprep.mubr.msk.f32.mxu0 %vm2720_vm1, %v2719_v6 }
 0x573   :  { %2413 = vmatprep.subr.mxu0 %v2719_v6 }
 0x574   :  { %2414 = vmatpush3.msra.mxu0 %v2806_v9 }
 0x575   :  { %2415 = vmatprep.subr.mxu0 %v2719_v6 }
 0x576   :  { %2416 = vmatpush3.msra.mxu0 %v2818_v11 }
 0x577   :  { %2417 = vmatprep.subr.mxu0 %v2719_v6 }
 0x578   :  { %2418 = vmatpush3.msra.mxu0 %v2827_v12 }
 0x579   :  { %2433 = vmatprep.subr.mxu0 %v2719_v6 }
 0x631   :  { %v471_v61 = vpop.f32.mrf.mxu0 }
 0x632   :  { %v475_v62 = vadd.f32 %v471_v61, %v155_v60 }
 0x633   :  { %v2399_v63 = vpop.f32.mrf.mxu0 }
 0x634   :  { %2607 = vtanh.f32 %v475_v62  ;;  %v2193_v1 = vmul.f32 -1.442695, %v475_v62 }
 0x636   :  { %2609 = vpow2.f32 %v2193_v1 }
 0x641   :  { %v2608_v0 = vpop.eup %2607 }
 0x642   :  { %485 = vrot.lane.b32.xlu0 %v2608_v0, %s2721_s12 }
 0x643   :  { %v2610_v2 = vpop.eup %2609 }
 0x644   :  { %v479_v3 = vadd.f32 1.0, %v2610_v2 }
 0x646   :  { %2611 = vrcp.f32 %v479_v3 }
 0x653   :  { %v2612_v5 = vpop.eup %2611 }
 0x654   :  { %v483_v10 = vmul.f32 %v2612_v5, %v388_v51 }
 0x6b4   :  { %v486_v7 = vpop.permute.xlu0 %485 }
 0x6b5   :  { %v488_v8 = vmul.f32 %v2612_v5, %v486_v7 }
 0x6b7   :  { %490 = vrot.lane.b32.xlu1 %v488_v8, %s2722_s3 }
 0x729   :  { %v491_v15 = vpop.permute.xlu1 %490 }
 0x72a   :  { %v493_v17 = vadd.f32 %v491_v15, %v483_v10 }
 0x72c   :  { %2613 = vtanh.f32 %v493_v17 }
 0x739   :  { %v2614_v20 = vpop.eup %2613 }
 0x73a   :  { %496 = vrot.lane.b32.xlu0 %v2614_v20, %s2721_s12  ;;  %v1040_v20 = vld [vmem:[#allocation3] sm:$0xff] }
 0x7ac   :  { %v497_v21 = vpop.permute.xlu0 %496 }
 0x7ad   :  { %v499_v22 = vmul.f32 %v2612_v5, %v497_v21  ;;  %v1034_v5 = vld [vmem:[%s3249_s4 + $0x18] sm:$0xff]  ;;  %v1032_v21 = vld [vmem:[%s3249_s4 + $0x8] sm:$0xff] }
 0x7af   :  { %501 = vrot.lane.b32.xlu1 %v499_v22, %s2722_s3  ;;  %v1031_v22 = vld [vmem:[%s3249_s4] sm:$0xff] }
 0x821   :  { %v502_v23 = vpop.permute.xlu1 %501 }
 0x822   :  { %505 = vst.msk [vmem:[#allocation3 + $0x10] sm:$0xff] %vm192_vm2, %v502_v23  ;;  %2409 = vmatmul.mubr.msk.f32.vlgmr.msra.gmra.mxu1 %vm192_vm2, %v502_v23  ;;  %v1041_v23 = vld [vmem:[#allocation3 + $0x8] sm:$0xff] }
 0x823   :  { %2423 = vmatpush3.msra.mxu1 %v2789_v4  ;;  %2430 = vmatprep.mubr.msk.f32.mxu1 %vm2720_vm1, %v2719_v6 }
 0x824   :  { %2424 = vmatprep.subr.mxu1 %v2719_v6 }
 0x825   :  { %2425 = vmatpush3.msra.mxu1 %v2806_v9 }
 0x826   :  { %2426 = vmatprep.subr.mxu1 %v2719_v6 }
 0x827   :  { %2427 = vmatpush3.msra.mxu1 %v2818_v11 }
 0x828   :  { %2428 = vmatprep.subr.mxu1 %v2719_v6 }
 0x829   :  { %2429 = vmatpush3.msra.mxu1 %v2827_v12 }
 0x82a   :  { %2444 = vmatprep.subr.mxu1 %v2719_v6 }
 0x8e2   :  { %v576_v25 = vpop.f32.mrf.mxu1 }
 0x8e3   :  { %v580_v26 = vadd.f32 %v576_v25, %v160_v24  ;;  %v1042_v24 = vld [vmem:[#allocation3 + $0x10] sm:$0xff] }
 0x8e4   :  { %v2410_v27 = vpop.f32.mrf.mxu1 }
 0x8e5   :  { %2615 = vtanh.f32 %v580_v26  ;;  %v2195_v29 = vmul.f32 -1.442695, %v580_v26 }
 0x8e7   :  { %2617 = vpow2.f32 %v2195_v29 }
 0x8f2   :  { %v2616_v28 = vpop.eup %2615 }
 0x8f3   :  { %590 = vrot.lane.b32.xlu0 %v2616_v28, %s2721_s12  ;;  %v175_v28 = vadd.f32 %v2863_v18, %v2865_v19 }
 0x8f4   :  { %v2618_v30 = vpop.eup %2617 }
 0x8f5   :  { %v584_v31 = vadd.f32 1.0, %v2618_v30 }
 0x8f7   :  { %2619 = vrcp.f32 %v584_v31 }
 0x904   :  { %v2620_v32 = vpop.eup %2619 }
 0x905   :  { %v588_v35 = vmul.f32 %v2620_v32, %v493_v17  ;;  %v1033_v17 = vld [vmem:[%s3249_s4 + $0x10] sm:$0xff] }
 0x965   :  { %v591_v33 = vpop.permute.xlu0 %590 }
 0x966   :  { %v593_v34 = vmul.f32 %v2620_v32, %v591_v33 }
 0x968   :  { %595 = vrot.lane.b32.xlu1 %v593_v34, %s2722_s3 }
 0x9da   :  { %v596_v36 = vpop.permute.xlu1 %595 }
 0x9db   :  { %v598_v37 = vadd.f32 %v596_v36, %v588_v35 }
 0x9dd   :  { %2621 = vtanh.f32 %v598_v37 }
 0x9ea   :  { %v2622_v38 = vpop.eup %2621 }
 0x9eb   :  { %601 = vrot.lane.b32.xlu0 %v2622_v38, %s2721_s12 }
 0xa5d   :  { %v602_v39 = vpop.permute.xlu0 %601 }
 0xa5e   :  { %v604_v40 = vmul.f32 %v2620_v32, %v602_v39 }
 0xa60   :  { %606 = vrot.lane.b32.xlu1 %v604_v40, %s2722_s3 }
 0xad2   :  { %v607_v41 = vpop.permute.xlu1 %606 }
 0xad3   :  { %610 = vst.msk [vmem:[#allocation3 + $0x18] sm:$0xff] %vm192_vm2, %v607_v41  ;;  %2420 = vmatmul.mubr.msk.f32.vlgmr.msra.gmra.mxu0 %vm192_vm2, %v607_v41 }
 0xad4   :  { %2434 = vmatpush3.msra.mxu0 %v2789_v4  ;;  %2441 = vmatprep.mubr.msk.f32.mxu0 %vm2720_vm1, %v2719_v6 }
 0xad5   :  { %2435 = vmatprep.subr.mxu0 %v2719_v6 }
 0xad6   :  { %2436 = vmatpush3.msra.mxu0 %v2806_v9 }
 0xad7   :  { %2437 = vmatprep.subr.mxu0 %v2719_v6 }
 0xad8   :  { %2438 = vmatpush3.msra.mxu0 %v2818_v11 }
 0xad9   :  { %2439 = vmatprep.subr.mxu0 %v2719_v6 }
 0xada   :  { %2440 = vmatpush3.msra.mxu0 %v2827_v12  ;;  %v1043_v25 = vld [vmem:[#allocation3 + $0x18] sm:$0xff] }
 0xadb   :  { %2455 = vmatprep.subr.mxu0 %v1034_v5 }
 0xb93   :  { %v681_v43 = vpop.f32.mrf.mxu0 }
 0xb94   :  { %v685_v44 = vadd.f32 %v681_v43, %v165_v42  ;;  %v3000_v42 = vld [vmem:[%s3250_s5 + $0x18] sm:$0xff]  ;;  %v3006_v43 = vld [vmem:[%s3250_s5 + $0x10] sm:$0xff] }
 0xb95   :  { %v2421_v45 = vpop.f32.mrf.mxu0 }
 0xb96   :  { %2623 = vtanh.f32 %v685_v44  ;;  %v2197_v47 = vmul.f32 -1.442695, %v685_v44  ;;  %v3013_v44 = vld [vmem:[%s3250_s5 + $0x8] sm:$0xff]  ;;  %v3020_v45 = vld [vmem:[%s3250_s5] sm:$0xff] }
 0xb98   :  { %2625 = vpow2.f32 %v2197_v47 }
 0xba3   :  { %v2624_v46 = vpop.eup %2623 }
 0xba4   :  { %695 = vrot.lane.b32.xlu0 %v2624_v46, %s2721_s12 }
 0xba5   :  { %v2626_v48 = vpop.eup %2625 }
 0xba6   :  { %v689_v49 = vadd.f32 1.0, %v2626_v48 }
 0xba8   :  { %2627 = vrcp.f32 %v689_v49 }
 0xbb5   :  { %v2628_v50 = vpop.eup %2627 }
 0xbb6   :  { %v693_v53 = vmul.f32 %v2628_v50, %v598_v37 }
 0xc16   :  { %v696_v51 = vpop.permute.xlu0 %695 }
 0xc17   :  { %v698_v52 = vmul.f32 %v2628_v50, %v696_v51 }
 0xc19   :  { %700 = vrot.lane.b32.xlu1 %v698_v52, %s2722_s3 }
 0xc8b   :  { %v701_v54 = vpop.permute.xlu1 %700 }
 0xc8c   :  { %v703_v14 = vadd.f32 %v701_v54, %v693_v53 }
 0xc8e   :  { %2629 = vtanh.f32 %v703_v14 }
 0xc9b   :  { %v2630_v55 = vpop.eup %2629 }
 0xc9c   :  { %706 = vrot.lane.b32.xlu0 %v2630_v55, %s2721_s12  ;;  %v3057_v55 = vld [vmem:[%s3251_s6] ss:$0 sm:$0xff] }
 0xd0e   :  { %v707_v56 = vpop.permute.xlu0 %706 }
 0xd0f   :  { %v709_v57 = vmul.f32 %v2628_v50, %v707_v56  ;;  %v180_v50 = vadd.f32 %v2858_v16, %v2863_v18 }
 0xd11   :  { %711 = vrot.lane.b32.xlu1 %v709_v57, %s2722_s3 }
 0xd83   :  { %v712_v58 = vpop.permute.xlu1 %711 }
 0xd84   :  { %715 = vst.msk [vmem:[#allocation3 + $0x20] sm:$0xff] %vm192_vm2, %v712_v58  ;;  %2431 = vmatmul.mubr.msk.f32.vlgmr.msra.gmra.mxu1 %vm192_vm2, %v712_v58 }
 0xd85   :  { %2445 = vmatpush3.msra.mxu1 %v2789_v4  ;;  %2452 = vmatprep.mubr.msk.f32.mxu1 %vm2720_vm1, %v2719_v6  ;;  %v170_v4 = vadd.f32 %v2854_v13, %v2863_v18 }
 0xd86   :  { %2446 = vmatprep.subr.mxu1 %v2719_v6 }
 0xd87   :  { %2447 = vmatpush3.msra.mxu1 %v2806_v9 }
 0xd88   :  { %2448 = vmatprep.subr.mxu1 %v2719_v6 }
 0xd89   :  { %2449 = vmatpush3.msra.mxu1 %v2818_v11 }
 0xd8a   :  { %2450 = vmatprep.subr.mxu1 %v2719_v6 }
 0xd8b   :  { %2451 = vmatpush3.msra.mxu1 %v2827_v12  ;;  %v1044_v26 = vld [vmem:[#allocation3 + $0x20] sm:$0xff] }
 0xd8c   :  { %2475 = vmatprep.subr.mxu1 %v2719_v6 }
 0xe44   :  { %v786_v59 = vpop.f32.mrf.mxu1 }
 0xe45   :  { %v790_v60 = vadd.f32 %v786_v59, %v170_v4 }
 0xe46   :  { %v2432_v61 = vpop.f32.mrf.mxu1 }
 0xe47   :  { %2631 = vtanh.f32 %v790_v60  ;;  %v2199_v9 = vmul.f32 -1.442695, %v790_v60 }
 0xe49   :  { %2633 = vpow2.f32 %v2199_v9 }
 0xe54   :  { %v2632_v62 = vpop.eup %2631 }
 0xe55   :  { %800 = vrot.lane.b32.xlu0 %v2632_v62, %s2721_s12 }
 0xe56   :  { %v2634_v63 = vpop.eup %2633 }
 0xe57   :  { %v794_v11 = vadd.f32 1.0, %v2634_v63 }
 0xe59   :  { %2635 = vrcp.f32 %v794_v11 }
 0xe66   :  { %v2636_v0 = vpop.eup %2635 }
 0xe67   :  { %v798_v2 = vmul.f32 %v2636_v0, %v703_v14 }
 0xec7   :  { %v801_v1 = vpop.permute.xlu0 %800 }
 0xec8   :  { %v803_v12 = vmul.f32 %v2636_v0, %v801_v1 }
 0xeca   :  { %805 = vrot.lane.b32.xlu1 %v803_v12, %s2722_s3 }
 0xf3c   :  { %v806_v3 = vpop.permute.xlu1 %805 }
 0xf3d   :  { %v808_v13 = vadd.f32 %v806_v3, %v798_v2 }
 0xf3f   :  { %2637 = vtanh.f32 %v808_v13 }
 0xf4c   :  { %v2638_v7 = vpop.eup %2637 }
 0xf4d   :  { %811 = vrot.lane.b32.xlu0 %v2638_v7, %s2721_s12 }
 0xfbf   :  { %v812_v8 = vpop.permute.xlu0 %811 }
 0xfc0   :  { %v814_v10 = vmul.f32 %v2636_v0, %v812_v8 }
 0xfc2   :  { %816 = vrot.lane.b32.xlu1 %v814_v10, %s2722_s3 }
0x1034   :  { %v817_v15 = vpop.permute.xlu1 %816 }
0x1035   :  { %820 = vst.msk [vmem:[#allocation3 + $0x28] sm:$0xff] %vm192_vm2, %v817_v15  ;;  %2442 = vmatmul.mubr.msk.f32.vlgmr.msra.gmra.mxu0 %vm192_vm2, %v817_v15 }
0x1036   :  { %2456 = vmatpush3.msra.mxu0 %v1034_v5  ;;  %2463 = vmatprep.mubr.msk.f32.mxu0 %vm192_vm2, %v1040_v20 }
0x1037   :  { %2457 = vmatprep.subr.mxu0 %v1033_v17 }
0x1038   :  { %2458 = vmatpush3.msra.mxu0 %v1033_v17 }
0x1039   :  { %2459 = vmatprep.subr.mxu0 %v1032_v21 }
0x103a   :  { %2460 = vmatpush3.msra.mxu0 %v1032_v21 }
0x103b   :  { %2461 = vmatprep.subr.mxu0 %v1031_v22 }
0x103c   :  { %2462 = vmatpush3.msra.mxu0 %v1031_v22  ;;  %v1045_v27 = vld [vmem:[#allocation3 + $0x28] sm:$0xff] }
0x103d   :  { %2464 = vmatmul.mubr.msk.f32.vlgmr.msra.gmra.mxu0 %vm192_vm2, %v1041_v23  ;;  %2497 = vmatprep.subr.mxu0 %v2719_v6 }
0x103e   :  { %2466 = vmatprep.mubr.msk.f32.mxu0 %vm192_vm2, %v1042_v24  ;;  %2498 = vmatpush3.msra.mxu0 %v3000_v42 }
0x103f   :  { %2499 = vmatprep.subr.mxu0 %v2719_v6 }
0x1040   :  { %2500 = vmatpush3.msra.mxu0 %v3006_v43 }
0x1041   :  { %2467 = vmatmul.mubr.msk.f32.gmra.mxu0 %vm192_vm2, %v1043_v25  ;;  %2501 = vmatprep.subr.mxu0 %v2719_v6 }
0x1042   :  { %2469 = vmatprep.mubr.msk.f32.mxu0 %vm192_vm2, %v1044_v26  ;;  %2502 = vmatpush3.msra.mxu0 %v3013_v44 }
0x1043   :  { %2503 = vmatprep.subr.mxu0 %v2719_v6 }
0x1044   :  { %2504 = vmatpush3.msra.mxu0 %v3020_v45 }
0x1045   :  { %2470 = vmatmul.mubr.msk.f32.gmra.mxu0 %vm192_vm2, %v1045_v27  ;;  %2519 = vmatprep.subr.mxu0 %v2719_v6 }
0x10f5   :  { %v891_v29 = vpop.f32.mrf.mxu0 }
0x10f6   :  { %v895_v30 = vadd.f32 %v891_v29, %v175_v28 }
0x10f7   :  { %v2443_v31 = vpop.f32.mrf.mxu0 }
0x10f8   :  { %2639 = vtanh.f32 %v895_v30  ;;  %v2201_v33 = vmul.f32 -1.442695, %v895_v30 }
0x10fa   :  { %2641 = vpow2.f32 %v2201_v33 }
0x10fd   :  { %v3052_v51 = vpop.f32.mrf.mxu0 }
0x10fe   :  { %v1150_v26 = vadd.f32 %v3052_v51, %v3057_v55 }
0x10ff   :  { %v1144_v14 = vpop.f32.mrf.mxu0 }
0x1100   :  { %v1145_v56 = vadd.f32 %v3057_v55, %v1144_v14 }
0x1105   :  { %v2640_v32 = vpop.eup %2639 }
0x1106   :  { %905 = vrot.lane.b32.xlu0 %v2640_v32, %s2721_s12 }
0x1107   :  { %v2642_v34 = vpop.eup %2641 }
0x1108   :  { %v899_v35 = vadd.f32 1.0, %v2642_v34 }
0x110a   :  { %2643 = vrcp.f32 %v899_v35 }
0x1117   :  { %v2644_v36 = vpop.eup %2643 }
0x1118   :  { %v903_v39 = vmul.f32 %v2644_v36, %v808_v13 }
0x1178   :  { %v906_v37 = vpop.permute.xlu0 %905 }
0x1179   :  { %v908_v38 = vmul.f32 %v2644_v36, %v906_v37 }
0x117b   :  { %910 = vrot.lane.b32.xlu1 %v908_v38, %s2722_s3 }
0x11ed   :  { %v911_v40 = vpop.permute.xlu1 %910 }
0x11ee   :  { %v2993_v19 = vadd.f32 %v911_v40, %v903_v39 }
0x11f0   :  { %2645 = vtanh.f32 %v2993_v19 }
0x11fd   :  { %v2646_v41 = vpop.eup %2645 }
0x11fe   :  { %916 = vrot.lane.b32.xlu0 %v2646_v41, %s2721_s12 }
0x1270   :  { %v917_v46 = vpop.permute.xlu0 %916 }
0x1271   :  { %v919_v47 = vmul.f32 %v2644_v36, %v917_v46 }
0x1273   :  { %921 = vrot.lane.b32.xlu1 %v919_v47, %s2722_s3 }
0x12e5   :  { %v922_v48 = vpop.permute.xlu1 %921 }
0x12e6   :  { %925 = vst.msk [vmem:[#allocation3 + $0x30] sm:$0xff] %vm192_vm2, %v922_v48  ;;  %2453 = vmatmul.mubr.msk.f32.vlgmr.msra.gmra.mxu1 %vm192_vm2, %v922_v48 }
0x12e7   :  { %2476 = vmatpush3.msra.mxu1 %v3000_v42  ;;  %2483 = vmatprep.mubr.msk.f32.mxu1 %vm2720_vm1, %v2719_v6 }
0x12e8   :  { %2477 = vmatprep.subr.mxu1 %v2719_v6 }
0x12e9   :  { %2478 = vmatpush3.msra.mxu1 %v3006_v43 }
0x12ea   :  { %2479 = vmatprep.subr.mxu1 %v2719_v6 }
0x12eb   :  { %2480 = vmatpush3.msra.mxu1 %v3013_v44 }
0x12ec   :  { %2481 = vmatprep.subr.mxu1 %v2719_v6 }
0x12ed   :  { %2482 = vmatpush3.msra.mxu1 %v3020_v45  ;;  %v1046_v49 = vld [vmem:[#allocation3 + $0x30] sm:$0xff] }
0x12ee   :  { %2484 = vmatmul.mubr.f32.vlgmr.msra.gmra.mxu1 %v2719_v6  ;;  %2472 = vmatprep.mubr.msk.f32.mxu0 %vm192_vm2, %v1046_v49  ;;  %v2468_v49 = vpop.f32.mrf.mxu0 }
0x12ef   :  { %2486 = vmatprep.subr.mxu1 %v2719_v6  ;;  %2494 = vmatprep.mubr.msk.f32.mxu1 %vm2720_vm1, %v2719_v6 }
0x12f0   :  { %2487 = vmatpush3.msra.mxu1 %v3000_v42 }
0x12f1   :  { %2488 = vmatprep.subr.mxu1 %v2719_v6 }
0x12f2   :  { %2489 = vmatpush3.msra.mxu1 %v3006_v43 }
0x12f3   :  { %2490 = vmatprep.subr.mxu1 %v2719_v6 }
0x12f4   :  { %2491 = vmatpush3.msra.mxu1 %v3013_v44 }
0x12f5   :  { %2492 = vmatprep.subr.mxu1 %v2719_v6 }
0x12f6   :  { %2493 = vmatpush3.msra.mxu1 %v3020_v45 }
0x12f7   :  { %2508 = vmatprep.subr.mxu1 %v2719_v6 }
0x13a6   :  { %v996_v52 = vpop.f32.mrf.mxu1 }
0x13a7   :  { %v1000_v53 = vadd.f32 %v996_v52, %v180_v50  ;;  %v1154_v50 = vpop.f32.mrf.mxu0 }
0x13a8   :  { %v2454_v54 = vpop.f32.mrf.mxu1  ;;  %v1155_v14 = vadd.f32 %v3057_v55, %v1154_v50 }
0x13a9   :  { %v2203_v2 = vmul.f32 -1.442695, %v1000_v53  ;;  %v3103_v51 = vpop.f32.mrf.mxu0 }
0x13ab   :  { %v3105_v52 = vpop.f32.mrf.mxu0 }
0x13ae   :  { %v1258_v57 = vpop.f32.mrf.mxu1 }
0x13af   :  { %v1262_v58 = vadd.f32 %v1258_v57, %v1145_v56 }
0x13b0   :  { %v2485_v4 = vpop.f32.mrf.mxu1 }
0x13b1   :  { %2647 = vtanh.f32 %v1262_v58  ;;  %v2213_v16 = vmul.f32 -1.442695, %v1262_v58 }
0x13b3   :  { %2649 = vpow2.f32 %v2213_v16 }
0x13be   :  { %v2648_v59 = vpop.eup %2647 }
0x13bf   :  { %1272 = vrot.lane.b32.xlu0 %v2648_v59, %s2721_s12 }
0x13c0   :  { %v2650_v18 = vpop.eup %2649 }
0x13c1   :  { %v1266_v60 = vadd.f32 1.0, %v2650_v18 }
0x13c3   :  { %2651 = vrcp.f32 %v1266_v60 }
0x13d0   :  { %v2652_v61 = vpop.eup %2651 }
0x13d1   :  { %v1270_v63 = vmul.f32 0.0, %v2652_v61 }
0x1431   :  { %v1273_v62 = vpop.permute.xlu0 %1272 }
0x1432   :  { %v1275_v9 = vmul.f32 %v2652_v61, %v1273_v62 }
0x1434   :  { %1277 = vrot.lane.b32.xlu1 %v1275_v9, %s2722_s3 }
0x14a6   :  { %v1278_v11 = vpop.permute.xlu1 %1277 }
0x14a7   :  { %v1280_v0 = vadd.f32 %v1278_v11, %v1270_v63 }
0x14a9   :  { %2653 = vtanh.f32 %v1280_v0 }
0x14aa   :  { %2655 = vtanh.f32 %v1000_v53 }
0x14ab   :  { %2657 = vpow2.f32 %v2203_v2 }
0x14b6   :  { %v2654_v1 = vpop.eup %2653 }
0x14b7   :  { %1283 = vrot.lane.b32.xlu0 %v2654_v1, %s2721_s12  ;;  %v2656_v12 = vpop.eup %2655 }
0x14b8   :  { %v2658_v3 = vpop.eup %2657 }
0x14b9   :  { %v1004_v13 = vadd.f32 1.0, %v2658_v3  ;;  %v1160_v3 = vadd.f32 %v2468_v49, %v3057_v55 }
0x14bb   :  { %1010 = vrot.lane.b32.xlu0 %v2656_v12, %s2721_s12  ;;  %2659 = vrcp.f32 %v1004_v13 }
0x14c8   :  { %v2660_v8 = vpop.eup %2659 }
0x14c9   :  { %v1008_v20 = vmul.f32 %v2660_v8, %v2993_v19 }
0x1529   :  { %v1284_v5 = vpop.permute.xlu0 %1283 }
0x152a   :  { %v1286_v7 = vmul.f32 %v2652_v61, %v1284_v5 }
0x152c   :  { %1288 = vrot.lane.b32.xlu1 %v1286_v7, %s2722_s3 }
0x152d   :  { %v1011_v10 = vpop.permute.xlu0 %1010 }
0x152e   :  { %v1013_v15 = vmul.f32 %v2660_v8, %v1011_v10 }
0x1530   :  { %1015 = vrot.lane.b32.xlu0 %v1013_v15, %s2722_s3 }
0x159e   :  { %v1289_v17 = vpop.permute.xlu1 %1288 }
0x159f   :  { %1291 = vst.msk [vmem:[#allocation4] sm:$0xff] %vm192_vm2, %v1289_v17  ;;  %2495 = vmatmul.mubr.msk.f32.vlgmr.msra.gmra.mxu1 %vm192_vm2, %v1289_v17 }
0x15a0   :  { %2509 = vmatpush3.msra.mxu1 %v3000_v42  ;;  %2516 = vmatprep.mubr.msk.f32.mxu1 %vm2720_vm1, %v2719_v6 }
0x15a1   :  { %2510 = vmatprep.subr.mxu1 %v2719_v6 }
0x15a2   :  { %v1016_v21 = vpop.permute.xlu0 %1015  ;;  %2511 = vmatpush3.msra.mxu1 %v3006_v43 }
0x15a3   :  { %v1018_v22 = vadd.f32 %v1016_v21, %v1008_v20  ;;  %2512 = vmatprep.subr.mxu1 %v2719_v6 }
0x15a4   :  { %2513 = vmatpush3.msra.mxu1 %v3013_v44 }
0x15a5   :  { %2661 = vtanh.f32 %v1018_v22  ;;  %2514 = vmatprep.subr.mxu1 %v2719_v6 }
0x15a6   :  { %2515 = vmatpush3.msra.mxu1 %v3020_v45 }
0x15a7   :  { %2530 = vmatprep.subr.mxu1 %v2719_v6 }
0x15b2   :  { %v2662_v23 = vpop.eup %2661 }
0x15b3   :  { %1021 = vrot.lane.b32.xlu0 %v2662_v23, %s2721_s12 }
0x1625   :  { %v1022_v24 = vpop.permute.xlu0 %1021 }
0x1626   :  { %v1024_v25 = vmul.f32 %v2660_v8, %v1022_v24 }
0x1628   :  { %1026 = vrot.lane.b32.xlu0 %v1024_v25, %s2722_s3 }
0x165f   :  { %v1361_v27 = vpop.f32.mrf.mxu1 }
0x1660   :  { %v1365_v28 = vadd.f32 %v1361_v27, %v1150_v26 }
0x1661   :  { %v2496_v29 = vpop.f32.mrf.mxu1 }
0x1662   :  { %2663 = vtanh.f32 %v1365_v28  ;;  %v2215_v33 = vmul.f32 -1.442695, %v1365_v28 }
0x1664   :  { %2665 = vpow2.f32 %v2215_v33 }
0x166f   :  { %v2664_v30 = vpop.eup %2663 }
0x1670   :  { %1375 = vrot.lane.b32.xlu1 %v2664_v30, %s2721_s12  ;;  %v1165_v30 = vadd.f32 %v3057_v55, %v3105_v52  ;;  %v1170_v52 = vadd.f32 %v3103_v51, %v3057_v55 }
0x1671   :  { %v2666_v34 = vpop.eup %2665 }
0x1672   :  { %v1369_v35 = vadd.f32 1.0, %v2666_v34 }
0x1674   :  { %2667 = vrcp.f32 %v1369_v35 }
0x1681   :  { %v2668_v36 = vpop.eup %2667 }
0x1682   :  { %v1373_v39 = vmul.f32 %v2668_v36, %v1280_v0 }
0x169a   :  { %v1027_v31 = vpop.permute.xlu0 %1026 }
0x169b   :  { %1030 = vst.msk [vmem:[#allocation3 + $0x38] sm:$0xff] %vm192_vm2, %v1027_v31 }
0x16a2   :  { %v1047_v32 = vld [vmem:[#allocation3 + $0x38] sm:$0xff] }
0x16a3   :  { %2473 = vmatmul.mubr.msk.f32.gmra.mxu0 %vm192_vm2, %v1047_v32 }
0x16a4   :  { %2505 = vmatprep.mubr.msk.f32.mxu0 %vm2720_vm1, %v2719_v6 }
0x16e2   :  { %v1376_v37 = vpop.permute.xlu1 %1375 }
0x16e3   :  { %v1378_v38 = vmul.f32 %v2668_v36, %v1376_v37 }
0x16e5   :  { %1380 = vrot.lane.b32.xlu1 %v1378_v38, %s2722_s3 }
0x1757   :  { %v1381_v40 = vpop.permute.xlu1 %1380 }
0x1758   :  { %v1383_v19 = vadd.f32 %v1381_v40, %v1373_v39 }
0x175a   :  { %2669 = vtanh.f32 %v1383_v19 }
0x1763   :  { %v3107_v53 = vpop.f32.mrf.mxu0 }
0x1765   :  { %v3109_v54 = vpop.f32.mrf.mxu0 }
0x1767   :  { %v2670_v41 = vpop.eup %2669 }
0x1768   :  { %1386 = vrot.lane.b32.xlu1 %v2670_v41, %s2721_s12 }
0x17da   :  { %v1387_v46 = vpop.permute.xlu1 %1386 }
0x17db   :  { %v1389_v47 = vmul.f32 %v2668_v36, %v1387_v46 }
0x17dd   :  { %1391 = vrot.lane.b32.xlu1 %v1389_v47, %s2722_s3 }
0x184f   :  { %v1392_v48 = vpop.permute.xlu1 %1391 }
0x1850   :  { %1395 = vst.msk [vmem:[#allocation4 + $0x8] sm:$0xff] %vm192_vm2, %v1392_v48  ;;  %2506 = vmatmul.mubr.msk.f32.vlgmr.msra.gmra.mxu0 %vm192_vm2, %v1392_v48 }
0x1851   :  { %2520 = vmatpush3.msra.mxu0 %v3000_v42  ;;  %2527 = vmatprep.mubr.msk.f32.mxu0 %vm2720_vm1, %v2719_v6 }
0x1852   :  { %2521 = vmatprep.subr.mxu0 %v2719_v6 }
0x1853   :  { %2522 = vmatpush3.msra.mxu0 %v3006_v43 }
0x1854   :  { %2523 = vmatprep.subr.mxu0 %v2719_v6 }
0x1855   :  { %2524 = vmatpush3.msra.mxu0 %v3013_v44 }
0x1856   :  { %2525 = vmatprep.subr.mxu0 %v2719_v6 }
0x1857   :  { %2526 = vmatpush3.msra.mxu0 %v3020_v45 }
0x1858   :  { %2541 = vmatprep.subr.mxu0 %v2719_v6 }
0x1910   :  { %v1465_v56 = vpop.f32.mrf.mxu0 }
0x1911   :  { %v1469_v57 = vadd.f32 %v1465_v56, %v1155_v14 }
0x1912   :  { %v2507_v58 = vpop.f32.mrf.mxu0 }
0x1913   :  { %2671 = vtanh.f32 %v1469_v57  ;;  %v2217_v59 = vmul.f32 -1.442695, %v1469_v57 }
0x1915   :  { %2673 = vpow2.f32 %v2217_v59 }
0x1920   :  { %v2672_v4 = vpop.eup %2671 }
0x1921   :  { %1479 = vrot.lane.b32.xlu0 %v2672_v4, %s2721_s12 }
0x1922   :  { %v2674_v16 = vpop.eup %2673 }
0x1923   :  { %v1473_v18 = vadd.f32 1.0, %v2674_v16 }
0x1925   :  { %2675 = vrcp.f32 %v1473_v18  ;;  %v2031_v18 = vld [vmem:[%s3252_s7 + $0x18] sm:$0xff] }
0x1932   :  { %v2676_v60 = vpop.eup %2675 }
0x1933   :  { %v1477_v9 = vmul.f32 %v2676_v60, %v1383_v19 }
0x1993   :  { %v1480_v61 = vpop.permute.xlu0 %1479 }
0x1994   :  { %v1482_v62 = vmul.f32 %v2676_v60, %v1480_v61 }
0x1996   :  { %1484 = vrot.lane.b32.xlu1 %v1482_v62, %s2722_s3 }
0x1a08   :  { %v1485_v63 = vpop.permute.xlu1 %1484 }
0x1a09   :  { %v1487_v11 = vadd.f32 %v1485_v63, %v1477_v9  ;;  %v2030_v63 = vld [vmem:[%s3252_s7 + $0x10] sm:$0xff] }
0x1a0b   :  { %2677 = vtanh.f32 %v1487_v11 }
0x1a18   :  { %v2678_v0 = vpop.eup %2677 }
0x1a19   :  { %1490 = vrot.lane.b32.xlu0 %v2678_v0, %s2721_s12  ;;  %v2029_v0 = vld [vmem:[%s3252_s7 + $0x8] sm:$0xff] }
0x1a8b   :  { %v1491_v1 = vpop.permute.xlu0 %1490 }
0x1a8c   :  { %v1493_v12 = vmul.f32 %v2676_v60, %v1491_v1  ;;  %v2028_v1 = vld [vmem:[%s3252_s7] sm:$0xff] }
0x1a8e   :  { %1495 = vrot.lane.b32.xlu1 %v1493_v12, %s2722_s3  ;;  %v2021_v12 = vld [vmem:[#allocation4 + $0x8] sm:$0xff] }
0x1b00   :  { %v1496_v2 = vpop.permute.xlu1 %1495 }
0x1b01   :  { %1499 = vst.msk [vmem:[#allocation4 + $0x10] sm:$0xff] %vm192_vm2, %v1496_v2  ;;  %2517 = vmatmul.mubr.msk.f32.vlgmr.msra.gmra.mxu1 %vm192_vm2, %v1496_v2 }
0x1b02   :  { %2531 = vmatpush3.msra.mxu1 %v3000_v42  ;;  %2538 = vmatprep.mubr.msk.f32.mxu1 %vm2720_vm1, %v2719_v6 }
0x1b03   :  { %2532 = vmatprep.subr.mxu1 %v2719_v6 }
0x1b04   :  { %2533 = vmatpush3.msra.mxu1 %v3006_v43 }
0x1b05   :  { %2534 = vmatprep.subr.mxu1 %v2719_v6 }
0x1b06   :  { %2535 = vmatpush3.msra.mxu1 %v3013_v44 }
0x1b07   :  { %2536 = vmatprep.subr.mxu1 %v2719_v6 }
0x1b08   :  { %2537 = vmatpush3.msra.mxu1 %v3020_v45  ;;  %v2022_v2 = vld [vmem:[#allocation4 + $0x10] sm:$0xff] }
0x1b09   :  { %2552 = vmatprep.subr.mxu1 %v2719_v6 }
0x1bc1   :  { %v1569_v13 = vpop.f32.mrf.mxu1 }
0x1bc2   :  { %v1573_v5 = vadd.f32 %v1569_v13, %v1160_v3 }
0x1bc3   :  { %v2518_v7 = vpop.f32.mrf.mxu1 }
0x1bc4   :  { %2679 = vtanh.f32 %v1573_v5  ;;  %v2219_v10 = vmul.f32 -1.442695, %v1573_v5  ;;  %v1175_v7 = vadd.f32 %v3057_v55, %v3109_v54 }
0x1bc6   :  { %2681 = vpow2.f32 %v2219_v10 }
0x1bd1   :  { %v2680_v8 = vpop.eup %2679 }
0x1bd2   :  { %1583 = vrot.lane.b32.xlu0 %v2680_v8, %s2721_s12 }
0x1bd3   :  { %v2682_v15 = vpop.eup %2681 }
0x1bd4   :  { %v1577_v17 = vadd.f32 1.0, %v2682_v15 }
0x1bd6   :  { %2683 = vrcp.f32 %v1577_v17  ;;  %v3195_v17 = vld [vmem:[%s3253_s8] ss:$0 sm:$0xff] }
0x1be3   :  { %v2684_v20 = vpop.eup %2683 }
0x1be4   :  { %v1581_v23 = vmul.f32 %v2684_v20, %v1487_v11  ;;  %v2020_v11 = vld [vmem:[#allocation4] sm:$0xff] }
0x1c44   :  { %v1584_v21 = vpop.permute.xlu0 %1583 }
0x1c45   :  { %v1586_v22 = vmul.f32 %v2684_v20, %v1584_v21 }
0x1c47   :  { %1588 = vrot.lane.b32.xlu1 %v1586_v22, %s2722_s3 }
0x1cb9   :  { %v1589_v24 = vpop.permute.xlu1 %1588 }
0x1cba   :  { %v1591_v25 = vadd.f32 %v1589_v24, %v1581_v23 }
0x1cbc   :  { %2685 = vtanh.f32 %v1591_v25 }
0x1cc9   :  { %v2686_v26 = vpop.eup %2685 }
0x1cca   :  { %1594 = vrot.lane.b32.xlu0 %v2686_v26, %s2721_s12 }
0x1d3c   :  { %v1595_v27 = vpop.permute.xlu0 %1594 }
0x1d3d   :  { %v1597_v28 = vmul.f32 %v2684_v20, %v1595_v27 }
0x1d3f   :  { %1599 = vrot.lane.b32.xlu1 %v1597_v28, %s2722_s3 }
0x1db1   :  { %v1600_v29 = vpop.permute.xlu1 %1599 }
0x1db2   :  { %1603 = vst.msk [vmem:[#allocation4 + $0x18] sm:$0xff] %vm192_vm2, %v1600_v29  ;;  %2528 = vmatmul.mubr.msk.f32.vlgmr.msra.gmra.mxu0 %vm192_vm2, %v1600_v29 }
0x1db3   :  { %2542 = vmatpush3.msra.mxu0 %v3000_v42  ;;  %2549 = vmatprep.mubr.msk.f32.mxu0 %vm2720_vm1, %v2719_v6 }
0x1db4   :  { %2543 = vmatprep.subr.mxu0 %v2719_v6 }
0x1db5   :  { %2544 = vmatpush3.msra.mxu0 %v3006_v43 }
0x1db6   :  { %2545 = vmatprep.subr.mxu0 %v2719_v6 }
0x1db7   :  { %2546 = vmatpush3.msra.mxu0 %v3013_v44 }
0x1db8   :  { %2547 = vmatprep.subr.mxu0 %v2719_v6 }
0x1db9   :  { %2548 = vmatpush3.msra.mxu0 %v3020_v45  ;;  %v2023_v3 = vld [vmem:[#allocation4 + $0x18] sm:$0xff] }
0x1dba   :  { %2563 = vmatprep.subr.mxu0 %v2031_v18 }
0x1e72   :  { %v1673_v31 = vpop.f32.mrf.mxu0 }
0x1e73   :  { %v1677_v32 = vadd.f32 %v1673_v31, %v1165_v30 }
0x1e74   :  { %v2529_v33 = vpop.f32.mrf.mxu0 }
0x1e75   :  { %2687 = vtanh.f32 %v1677_v32  ;;  %v2221_v35 = vmul.f32 -1.442695, %v1677_v32 }
0x1e77   :  { %2689 = vpow2.f32 %v2221_v35 }
0x1e82   :  { %v2688_v34 = vpop.eup %2687 }
0x1e83   :  { %1687 = vrot.lane.b32.xlu0 %v2688_v34, %s2721_s12 }
0x1e84   :  { %v2690_v36 = vpop.eup %2689 }
0x1e85   :  { %v1681_v37 = vadd.f32 1.0, %v2690_v36 }
0x1e87   :  { %2691 = vrcp.f32 %v1681_v37 }
0x1e94   :  { %v2692_v38 = vpop.eup %2691 }
0x1e95   :  { %v1685_v19 = vmul.f32 %v2692_v38, %v1591_v25 }
0x1ef5   :  { %v1688_v39 = vpop.permute.xlu0 %1687 }
0x1ef6   :  { %v1690_v40 = vmul.f32 %v2692_v38, %v1688_v39 }
0x1ef8   :  { %1692 = vrot.lane.b32.xlu1 %v1690_v40, %s2722_s3 }
0x1f6a   :  { %v1693_v41 = vpop.permute.xlu1 %1692 }
0x1f6b   :  { %v1695_v46 = vadd.f32 %v1693_v41, %v1685_v19 }
0x1f6d   :  { %2693 = vtanh.f32 %v1695_v46 }
0x1f7a   :  { %v2694_v47 = vpop.eup %2693 }
0x1f7b   :  { %1698 = vrot.lane.b32.xlu0 %v2694_v47, %s2721_s12 }
0x1fed   :  { %v1699_v48 = vpop.permute.xlu0 %1698 }
0x1fee   :  { %v1701_v49 = vmul.f32 %v2692_v38, %v1699_v48 }
0x1ff0   :  { %1703 = vrot.lane.b32.xlu1 %v1701_v49, %s2722_s3  ;;  %v1180_v49 = vadd.f32 %v3107_v53, %v3057_v55 }
0x2062   :  { %v1704_v50 = vpop.permute.xlu1 %1703 }
0x2063   :  { %1707 = vst.msk [vmem:[#allocation4 + $0x20] sm:$0xff] %vm192_vm2, %v1704_v50  ;;  %2539 = vmatmul.mubr.msk.f32.vlgmr.msra.gmra.mxu1 %vm192_vm2, %v1704_v50 }
0x2064   :  { %2553 = vmatpush3.msra.mxu1 %v3000_v42  ;;  %2560 = vmatprep.mubr.msk.f32.mxu1 %vm2720_vm1, %v2719_v6 }
0x2065   :  { %2554 = vmatprep.subr.mxu1 %v2719_v6 }
0x2066   :  { %2555 = vmatpush3.msra.mxu1 %v3006_v43 }
0x2067   :  { %2556 = vmatprep.subr.mxu1 %v2719_v6 }
0x2068   :  { %2557 = vmatpush3.msra.mxu1 %v3013_v44 }
0x2069   :  { %2558 = vmatprep.subr.mxu1 %v2719_v6 }
0x206a   :  { %2559 = vmatpush3.msra.mxu1 %v3020_v45  ;;  %v2024_v13 = vld [vmem:[#allocation4 + $0x20] sm:$0xff] }
0x2123   :  { %v1777_v14 = vpop.f32.mrf.mxu1 }
0x2124   :  { %v1781_v42 = vadd.f32 %v1777_v14, %v1170_v52 }
0x2125   :  { %v2540_v56 = vpop.f32.mrf.mxu1 }
0x2126   :  { %2695 = vtanh.f32 %v1781_v42  ;;  %v2223_v58 = vmul.f32 -1.442695, %v1781_v42 }
0x2128   :  { %2697 = vpow2.f32 %v2223_v58 }
0x2133   :  { %v2696_v57 = vpop.eup %2695 }
0x2134   :  { %1791 = vrot.lane.b32.xlu0 %v2696_v57, %s2721_s12 }
0x2135   :  { %v2698_v43 = vpop.eup %2697 }
0x2136   :  { %v1785_v4 = vadd.f32 1.0, %v2698_v43 }
0x2138   :  { %2699 = vrcp.f32 %v1785_v4 }
0x2145   :  { %v2700_v44 = vpop.eup %2699 }
0x2146   :  { %v1789_v45 = vmul.f32 %v2700_v44, %v1695_v46 }
0x21a6   :  { %v1792_v59 = vpop.permute.xlu0 %1791 }
0x21a7   :  { %v1794_v6 = vmul.f32 %v2700_v44, %v1792_v59 }
0x21a9   :  { %1796 = vrot.lane.b32.xlu1 %v1794_v6, %s2722_s3 }
0x221b   :  { %v1797_v16 = vpop.permute.xlu1 %1796 }
0x221c   :  { %v3165_v51 = vadd.f32 %v1797_v16, %v1789_v45 }
0x221e   :  { %2701 = vtanh.f32 %v3165_v51 }
0x222b   :  { %v2702_v60 = vpop.eup %2701 }
0x222c   :  { %1802 = vrot.lane.b32.xlu0 %v2702_v60, %s2721_s12 }
0x229e   :  { %v1803_v61 = vpop.permute.xlu0 %1802 }
0x229f   :  { %v1805_v62 = vmul.f32 %v2700_v44, %v1803_v61 }
0x22a1   :  { %1807 = vrot.lane.b32.xlu1 %v1805_v62, %s2722_s3 }
0x2313   :  { %v1808_v9 = vpop.permute.xlu1 %1807 }
0x2314   :  { %1811 = vst.msk [vmem:[#allocation4 + $0x28] sm:$0xff] %vm192_vm2, %v1808_v9  ;;  %2550 = vmatmul.mubr.msk.f32.vlgmr.msra.gmra.mxu0 %vm192_vm2, %v1808_v9 }
0x2315   :  { %2564 = vmatpush3.msra.mxu0 %v2031_v18  ;;  %2571 = vmatprep.mubr.msk.f32.mxu0 %vm192_vm2, %v2020_v11 }
0x2316   :  { %2565 = vmatprep.subr.mxu0 %v2030_v63 }
0x2317   :  { %2566 = vmatpush3.msra.mxu0 %v2030_v63 }
0x2318   :  { %2567 = vmatprep.subr.mxu0 %v2029_v0 }
0x2319   :  { %2568 = vmatpush3.msra.mxu0 %v2029_v0 }
0x231a   :  { %2569 = vmatprep.subr.mxu0 %v2028_v1 }
0x231b   :  { %2570 = vmatpush3.msra.mxu0 %v2028_v1  ;;  %v2025_v5 = vld [vmem:[#allocation4 + $0x28] sm:$0xff] }
0x231c   :  { %2572 = vmatmul.mubr.msk.f32.vlgmr.msra.gmra.mxu0 %vm192_vm2, %v2021_v12 }
0x231d   :  { %2574 = vmatprep.mubr.msk.f32.mxu0 %vm192_vm2, %v2022_v2 }
0x2320   :  { %2575 = vmatmul.mubr.msk.f32.gmra.mxu0 %vm192_vm2, %v2023_v3 }
0x2321   :  { %2577 = vmatprep.mubr.msk.f32.mxu0 %vm192_vm2, %v2024_v13 }
0x2324   :  { %2578 = vmatmul.mubr.msk.f32.gmra.mxu0 %vm192_vm2, %v2025_v5 }
0x23d4   :  { %v1881_v8 = vpop.f32.mrf.mxu0 }
0x23d5   :  { %v1885_v10 = vadd.f32 %v1881_v8, %v1175_v7 }
0x23d6   :  { %v2551_v15 = vpop.f32.mrf.mxu0 }
0x23d7   :  { %2703 = vtanh.f32 %v1885_v10  ;;  %v2225_v32 = vmul.f32 -1.442695, %v1885_v10 }
0x23d9   :  { %2705 = vpow2.f32 %v2225_v32 }
0x23dc   :  { %v2573_v20 = vpop.f32.mrf.mxu0 }
0x23dd   :  { %v2135_v21 = vadd.f32 %v2573_v20, %v3195_v17 }
0x23de   :  { %v2129_v22 = vpop.f32.mrf.mxu0 }
0x23df   :  { %2169 = vst [vmem:[%s3254_s9 + $0x8] sm:$0xff] %v2135_v21  ;;  %v2130_v23 = vadd.f32 %v3195_v17, %v2129_v22 }
0x23e0   :  { %v2576_v54 = vpop.f32.mrf.mxu0 }
0x23e1   :  { %2168 = vst [vmem:[%s3254_s9] sm:$0xff] %v2130_v23  ;;  %v2145_v24 = vadd.f32 %v2576_v54, %v3195_v17 }
0x23e2   :  { %v2139_v25 = vpop.f32.mrf.mxu0 }
0x23e3   :  { %2171 = vst [vmem:[%s3254_s9 + $0x18] sm:$0xff] %v2145_v24  ;;  %v2140_v26 = vadd.f32 %v3195_v17, %v2139_v25 }
0x23e4   :  { %v2704_v27 = vpop.eup %2703  ;;  %v2579_v28 = vpop.f32.mrf.mxu0 }
0x23e5   :  { %2170 = vst [vmem:[%s3254_s9 + $0x10] sm:$0xff] %v2140_v26  ;;  %v2155_v29 = vadd.f32 %v2579_v28, %v3195_v17  ;;  %1895 = vrot.lane.b32.xlu0 %v2704_v27, %s2721_s12 }
0x23e6   :  { %v2149_v30 = vpop.f32.mrf.mxu0  ;;  %v2706_v33 = vpop.eup %2705 }
0x23e7   :  { %2173 = vst [vmem:[%s3254_s9 + $0x28] sm:$0xff] %v2155_v29  ;;  %v2150_v31 = vadd.f32 %v3195_v17, %v2149_v30  ;;  %v1889_v34 = vadd.f32 1.0, %v2706_v33 }
0x23e9   :  { %2172 = vst [vmem:[%s3254_s9 + $0x20] sm:$0xff] %v2150_v31  ;;  %2707 = vrcp.f32 %v1889_v34 }
0x23f6   :  { %v2708_v35 = vpop.eup %2707 }
0x23f7   :  { %v1893_v38 = vmul.f32 %v2708_v35, %v3165_v51 }
0x2457   :  { %v1896_v36 = vpop.permute.xlu0 %1895 }
0x2458   :  { %v1898_v37 = vmul.f32 %v2708_v35, %v1896_v36 }
0x245a   :  { %1900 = vrot.lane.b32.xlu1 %v1898_v37, %s2722_s3 }
0x24cc   :  { %v1901_v39 = vpop.permute.xlu1 %1900 }
0x24cd   :  { %v1903_v40 = vadd.f32 %v1901_v39, %v1893_v38 }
0x24cf   :  { %2709 = vtanh.f32 %v1903_v40 }
0x24dc   :  { %v2710_v19 = vpop.eup %2709 }
0x24dd   :  { %1906 = vrot.lane.b32.xlu0 %v2710_v19, %s2721_s12 }
0x254f   :  { %v1907_v41 = vpop.permute.xlu0 %1906 }
0x2550   :  { %v1909_v46 = vmul.f32 %v2708_v35, %v1907_v41 }
0x2552   :  { %1911 = vrot.lane.b32.xlu1 %v1909_v46, %s2722_s3 }
0x25c4   :  { %v1912_v47 = vpop.permute.xlu1 %1911 }
0x25c5   :  { %1915 = vst.msk [vmem:[#allocation4 + $0x30] sm:$0xff] %vm192_vm2, %v1912_v47  ;;  %2561 = vmatmul.mubr.msk.f32.vlgmr.msra.gmra.mxu1 %vm192_vm2, %v1912_v47 }
0x25cc   :  { %v2026_v48 = vld [vmem:[#allocation4 + $0x30] sm:$0xff] }
0x25cd   :  { %2580 = vmatprep.mubr.msk.f32.mxu0 %vm192_vm2, %v2026_v48 }
0x2685   :  { %v1985_v50 = vpop.f32.mrf.mxu1 }
0x2686   :  { %v1989_v52 = vadd.f32 %v1985_v50, %v1180_v49 }
0x2687   :  { %v2562_v14 = vpop.f32.mrf.mxu1 }
0x2688   :  { %2711 = vtanh.f32 %v1989_v52  ;;  %v2227_v56 = vmul.f32 -1.442695, %v1989_v52 }
0x268a   :  { %2713 = vpow2.f32 %v2227_v56 }
0x2695   :  { %v2712_v42 = vpop.eup %2711 }
0x2696   :  { %1999 = vrot.lane.b32.xlu0 %v2712_v42, %s2721_s12 }
0x2697   :  { %v2714_v57 = vpop.eup %2713 }
0x2698   :  { %v1993_v58 = vadd.f32 1.0, %v2714_v57 }
0x269a   :  { %2715 = vrcp.f32 %v1993_v58 }
0x26a7   :  { %v2716_v43 = vpop.eup %2715 }
0x26a8   :  { %v1997_v59 = vmul.f32 %v2716_v43, %v1903_v40 }
0x2708   :  { %v2000_v4 = vpop.permute.xlu0 %1999 }
0x2709   :  { %v2002_v44 = vmul.f32 %v2716_v43, %v2000_v4 }
0x270b   :  { %2004 = vrot.lane.b32.xlu1 %v2002_v44, %s2722_s3 }
0x277d   :  { %v2005_v6 = vpop.permute.xlu1 %2004 }
0x277e   :  { %v2007_v55 = vadd.f32 %v2005_v6, %v1997_v59 }
0x2780   :  { %2717 = vtanh.f32 %v2007_v55 }
0x278d   :  { %v2718_v53 = vpop.eup %2717 }
0x278e   :  { %2010 = vrot.lane.b32.xlu0 %v2718_v53, %s2721_s12 }
0x2800   :  { %v2011_v45 = vpop.permute.xlu0 %2010 }
0x2801   :  { %v2013_v16 = vmul.f32 %v2716_v43, %v2011_v45 }
0x2803   :  { %2015 = vrot.lane.b32.xlu1 %v2013_v16, %s2722_s3 }
0x2875   :  { %v2016_v51 = vpop.permute.xlu1 %2015 }
0x2876   :  { %2019 = vst.msk [vmem:[#allocation4 + $0x38] sm:$0xff] %vm192_vm2, %v2016_v51 }
0x287d   :  { %v2027_v18 = vld [vmem:[#allocation4 + $0x38] sm:$0xff] }
0x287e   :  { %2581 = vmatmul.mubr.msk.f32.gmra.mxu0 %vm192_vm2, %v2027_v18 }
0x293e   :  { %v2582_v60 = vpop.f32.mrf.mxu0 }
0x293f   :  { %v2165_v61 = vadd.f32 %v2582_v60, %v3195_v17 }
0x2940   :  { %v2159_v62 = vpop.f32.mrf.mxu0 }
0x2941   :  { %2175 = vst [vmem:[%s3254_s9 + $0x38] sm:$0xff] %v2165_v61  ;;  %v2160_v9 = vadd.f32 %v3195_v17, %v2159_v62 }
0x2943   :  { %2174 = vst [vmem:[%s3254_s9 + $0x30] sm:$0xff] %v2160_v9 }

</bundles_post_ra>
